<compile_context>
chip_gen: v5e
topology: v5e:2x2
jax: 0.10.0
libtpu: 0.0.40
codegen_flags: <defaults>
</compile_context>

<pallas_src>
import math
from functools import partial

import jax
import jax.numpy as jnp
import numpy as np
from jax.experimental import pallas as pl
from jax.experimental.pallas import tpu as pltpu


# ----------------------------------------------------------------------------
# Fused encoder kernel: one grid step = (one batch tile, one layer)
# ----------------------------------------------------------------------------

def _encoder_kernel(emb_ref, mask_ref, emb_g_ref, emb_b_ref,
                    wqkv_ref, bqkv_ref, wo_ref, bo_ref,
                    ln1_g_ref, ln1_b_ref, w1_ref, b1_ref,
                    w2_ref, b2_ref, ln2_g_ref, ln2_b_ref,
                    o_ref, h_ref, *, num_heads, eps):
    l = pl.program_id(1)
    n_layers = pl.num_programs(1)
    Bb, S, H = emb_ref.shape
    T = Bb * S
    Dh = H // num_heads

    def ln(v, g, b):                                    # f32 LayerNorm
        mu = jnp.mean(v, axis=-1, keepdims=True)
        var = jnp.mean(jnp.square(v - mu), axis=-1, keepdims=True)
        return (v - mu) * jax.lax.rsqrt(var + eps) * g + b

    # Init the carried hidden state with the embedding LayerNorm (first layer
    # step only); tokens flattened to (T, H) rows for all projection matmuls.
    @pl.when(l == 0)
    def _():
        x = emb_ref[...].astype(jnp.float32).reshape(T, H)
        h_ref[...] = ln(x, emb_g_ref[...], emb_b_ref[...])

    h = h_ref[...]                                      # (T, H) f32
    h_bf = h.astype(jnp.bfloat16)

    # Additive attention-mask bias, (Bb, 1, S); built once per layer step
    # (outside the head loop).
    bias = ((1.0 - mask_ref[...].astype(jnp.float32)) * -1e9)[:, None, :]

    attn_out = jnp.zeros((T, H), jnp.float32)
    for hd in range(num_heads):
        base = 3 * hd
        # Per-head Q/K/V projections; per-head weights selected along a
        # LEADING axis (free), 1/sqrt(Dh) already folded into the Q weights.
        q = jnp.dot(h_bf, wqkv_ref[base + 0],
                    preferred_element_type=jnp.float32) + bqkv_ref[base + 0]
        k = jnp.dot(h_bf, wqkv_ref[base + 1],
                    preferred_element_type=jnp.float32) + bqkv_ref[base + 1]
        v = jnp.dot(h_bf, wqkv_ref[base + 2],
                    preferred_element_type=jnp.float32) + bqkv_ref[base + 2]

        # Per-sequence attention via batched einsums on (Bb, S, Dh).
        q = q.reshape(Bb, S, Dh).astype(jnp.bfloat16)
        k = k.reshape(Bb, S, Dh).astype(jnp.bfloat16)
        v = v.reshape(Bb, S, Dh).astype(jnp.bfloat16)
        s = jnp.einsum("bqd,bkd->bqk", q, k,
                       preferred_element_type=jnp.float32) + bias   # (Bb,S,S)
        s = s - jnp.max(s, axis=-1, keepdims=True)
        p = jnp.exp(s)
        p = p * pl.reciprocal(jnp.sum(p, axis=-1, keepdims=True),
                              approx=True)                          # EUP divide
        ctx = jnp.einsum("bqk,bkd->bqd", p.astype(jnp.bfloat16), v,
                         preferred_element_type=jnp.float32)        # (Bb,S,Dh)

        # Head merge folded into the output projection; Wo slice is a leading-
        # axis index of the (nH, Dh, H) packed weight.
        attn_out = attn_out + jnp.dot(
            ctx.reshape(T, Dh).astype(jnp.bfloat16), wo_ref[hd],
            preferred_element_type=jnp.float32)
    attn_out = attn_out + bo_ref[0]

    h1 = ln(attn_out + h, ln1_g_ref[0], ln1_b_ref[0])               # (T, H)

    # Feed-forward block (gelu in f32), full-width matmuls over all T rows.
    ff = jnp.dot(h1.astype(jnp.bfloat16), w1_ref[0],
                 preferred_element_type=jnp.float32) + b1_ref[0]    # (T, I)
    ff = jax.nn.gelu(ff, approximate=True)
    ff = jnp.dot(ff.astype(jnp.bfloat16), w2_ref[0],
                 preferred_element_type=jnp.float32) + b2_ref[0]    # (T, H)
    h_new = ln(ff + h1, ln2_g_ref[0], ln2_b_ref[0])

    h_ref[...] = h_new                                  # carry to next layer

    @pl.when(l == n_layers - 1)
    def _():
        # Dense (Bb, H) output block: CLS row of every sequence in the tile.
        o_ref[...] = h_new.reshape(Bb, S, H)[:, 0, :].astype(o_ref.dtype)


def encoder_cls(emb, mask, pk, cfg):
    """emb: (B, S, H) f32, mask: (B, S) f32 -> (B, H) CLS embeddings."""
    B, S, H = emb.shape
    L, I, nH = cfg["num_layers"], cfg["intermediate"], cfg["num_heads"]
    Dh = H // nH

    # At these small shapes the whole batch is one tile (Bb*S token rows per
    # grid step); at scale pick Bb so Bb*S >= 256 rows to fill the MXU.
    Bb = B
    n_bt = B // Bb

    kernel = partial(_encoder_kernel, num_heads=nH, eps=1e-12)

    def per_layer(block):   # per-layer weight block, streamed along the l axis
        nd = len(block)
        return pl.BlockSpec(block, lambda b, l: (l,) + (0,) * (nd - 1))

    in_specs = [
        pl.BlockSpec((Bb, S, H), lambda b, l: (b, 0, 0)),   # embeddings (batch tile)
        pl.BlockSpec((Bb, S), lambda b, l: (b, 0)),         # attention mask
        pl.BlockSpec((1, H), lambda b, l: (0, 0)),          # emb LN gamma
        pl.BlockSpec((1, H), lambda b, l: (0, 0)),          # emb LN beta
        per_layer((3 * nH, H, Dh)),                         # wqkv (q/k/v, head leading)
        per_layer((3 * nH, 1, Dh)),                         # bqkv
        per_layer((nH, Dh, H)),                             # wo   (head leading)
        per_layer((1, 1, H)),                               # bo
        per_layer((1, 1, H)), per_layer((1, 1, H)),         # ln1 gamma / beta
        per_layer((1, H, I)), per_layer((1, 1, I)),         # w1 / b1
        per_layer((1, I, H)), per_layer((1, 1, H)),         # w2 / b2
        per_layer((1, 1, H)), per_layer((1, 1, H)),         # ln2 gamma / beta
    ]

    return pl.pallas_call(
        kernel,
        out_shape=jax.ShapeDtypeStruct((B, H), jnp.float32),
        grid=(n_bt, L),
        in_specs=in_specs,
        out_specs=pl.BlockSpec((Bb, H), lambda b, l: (b, 0)),
        scratch_shapes=[pltpu.VMEM((Bb * S, H), jnp.float32)],   # carried h state
        compiler_params=pltpu.CompilerParams(
            dimension_semantics=("parallel", "arbitrary"),       # megacore batch axis
            vmem_limit_bytes=32 * 1024 * 1024),
    )(emb, mask,
      pk["emb_ln_g"], pk["emb_ln_b"],
      pk["wqkv"], pk["bqkv"], pk["wo"], pk["bo"],
      pk["ln1_g"], pk["ln1_b"], pk["w1"], pk["b1"],
      pk["w2"], pk["b2"], pk["ln2_g"], pk["ln2_b"])


# ----------------------------------------------------------------------------
# Model params: small BERT encoder (SimcseModel.forward semantics)
# ----------------------------------------------------------------------------

CFG = dict(vocab_size=30, type_vocab_size=2, max_position=16,
           hidden=32, num_heads=2, num_layers=2, intermediate=64)


def init_params(key, cfg):
    H, I = cfg["hidden"], cfg["intermediate"]

    def dense(k, fan_in, fan_out):
        return 0.02 * jax.random.normal(k, (fan_in, fan_out), jnp.float32)

    keys = iter(jax.random.split(key, 64))
    p = {
        "word_emb": 0.02 * jax.random.normal(next(keys), (cfg["vocab_size"], H)),
        "pos_emb": 0.02 * jax.random.normal(next(keys), (cfg["max_position"], H)),
        "type_emb": 0.02 * jax.random.normal(next(keys), (cfg["type_vocab_size"], H)),
        "emb_ln_g": jnp.ones((H,), jnp.float32),
        "emb_ln_b": jnp.zeros((H,), jnp.float32),
        "layers": [],
    }
    for _ in range(cfg["num_layers"]):
        p["layers"].append({
            "wq": dense(next(keys), H, H), "bq": jnp.zeros((H,)),
            "wk": dense(next(keys), H, H), "bk": jnp.zeros((H,)),
            "wv": dense(next(keys), H, H), "bv": jnp.zeros((H,)),
            "wo": dense(next(keys), H, H), "bo": jnp.zeros((H,)),
            "ln1_g": jnp.ones((H,)), "ln1_b": jnp.zeros((H,)),
            "w1": dense(next(keys), H, I), "b1": jnp.zeros((I,)),
            "w2": dense(next(keys), I, H), "b2": jnp.zeros((H,)),
            "ln2_g": jnp.ones((H,)), "ln2_b": jnp.zeros((H,)),
        })
    return p


def pack_params(params, cfg):
    """One-time host-side packing (call ONCE, outside the forward):
       * per-layer weights get a leading layer axis so the layer grid axis can
         stream them (double-buffered by Pallas),
       * per-head Q/K/V/Wo re-packed with head (and q/k/v selector) on leading
         (non-lane) axes -> no lane slicing in the kernel head loop,
       * 1/sqrt(Dh) folded into Wq / bq,
       * matmul weights cast to bf16 (MXU operands); biases / LN params f32."""
    layers = params["layers"]
    H, nH = cfg["hidden"], cfg["num_heads"]
    Dh = H // nH
    scale = 1.0 / math.sqrt(Dh)
    f32, bf16 = jnp.float32, jnp.bfloat16

    def heads_w(w):   # (H, H) -> (nH, H, Dh)
        return w.reshape(H, nH, Dh).transpose(1, 0, 2)

    def heads_b(b):   # (H,) -> (nH, 1, Dh)
        return b.reshape(nH, 1, Dh)

    wqkv, bqkv, wo = [], [], []
    for lp in layers:
        wqkv.append(jnp.stack([heads_w(lp["wq"] * scale),
                               heads_w(lp["wk"]),
                               heads_w(lp["wv"])], axis=1).reshape(3 * nH, H, Dh))
        bqkv.append(jnp.stack([heads_b(lp["bq"] * scale),
                               heads_b(lp["bk"]),
                               heads_b(lp["bv"])], axis=1).reshape(3 * nH, 1, Dh))
        wo.append(lp["wo"].reshape(nH, Dh, H))

    return dict(
        emb_ln_g=params["emb_ln_g"][None, :].astype(f32),
        emb_ln_b=params["emb_ln_b"][None, :].astype(f32),
        wqkv=jnp.concatenate(wqkv, axis=0).astype(bf16),          # (L*3*nH, H, Dh)
        bqkv=jnp.concatenate(bqkv, axis=0).astype(f32),           # (L*3*nH, 1, Dh)
        wo=jnp.concatenate(wo, axis=0).astype(bf16),              # (L*nH, Dh, H)
        bo=jnp.stack([lp["bo"][None, :] for lp in layers]).astype(f32),     # (L,1,H)
        ln1_g=jnp.stack([lp["ln1_g"][None, :] for lp in layers]).astype(f32),
        ln1_b=jnp.stack([lp["ln1_b"][None, :] for lp in layers]).astype(f32),
        w1=jnp.stack([lp["w1"] for lp in layers]).astype(bf16),             # (L,H,I)
        b1=jnp.stack([lp["b1"][None, :] for lp in layers]).astype(f32),     # (L,1,I)
        w2=jnp.stack([lp["w2"] for lp in layers]).astype(bf16),             # (L,I,H)
        b2=jnp.stack([lp["b2"][None, :] for lp in layers]).astype(f32),
        ln2_g=jnp.stack([lp["ln2_g"][None, :] for lp in layers]).astype(f32),
        ln2_b=jnp.stack([lp["ln2_b"][None, :] for lp in layers]).astype(f32),
    )


def simcse_forward(params, packed, input_ids, attention_mask, token_type_ids, cfg):
    """Pallas-backed forward: returns out.last_hidden_state[:, 0]."""
    B, S = input_ids.shape
    # TODO(synk): embedding-table gathers (word/pos/type) stay in plain JAX —
    # data-dependent gather; a DMA-gather kernel is overkill at this size.
    emb = (params["word_emb"][input_ids]
           + params["pos_emb"][:S][None, :, :]
           + params["type_emb"][token_type_ids]).astype(jnp.float32)   # (B, S, H)
    mask = attention_mask.astype(jnp.float32)                          # (B, S)
    return encoder_cls(emb, mask, packed, cfg)                         # (B, H)


# ----------------------------------------------------------------------------
# Pure-JAX f32 reference (same math, no Pallas) for correctness
# ----------------------------------------------------------------------------

def _ref_forward(params, input_ids, attention_mask, token_type_ids, cfg):
    B, S = input_ids.shape
    H, nH = cfg["hidden"], cfg["num_heads"]
    Dh = H // nH

    def ln(x, g, b, eps=1e-12):
        mu = jnp.mean(x, -1, keepdims=True)
        var = jnp.mean(jnp.square(x - mu), -1, keepdims=True)
        return (x - mu) * jax.lax.rsqrt(var + eps) * g + b

    emb = (params["word_emb"][input_ids] + params["pos_emb"][:S][None]
           + params["type_emb"][token_type_ids])
    h = ln(emb, params["emb_ln_g"], params["emb_ln_b"])
    bias = ((1.0 - attention_mask.astype(jnp.float32)) * -1e9)[:, None, None, :]
    for lp in params["layers"]:
        def sh(t): return t.reshape(B, S, nH, Dh).transpose(0, 2, 1, 3)
        q, k, v = (sh(h @ lp["wq"] + lp["bq"]),
                   sh(h @ lp["wk"] + lp["bk"]),
                   sh(h @ lp["wv"] + lp["bv"]))
        s = jnp.einsum("bhqd,bhkd->bhqk", q, k) / math.sqrt(Dh) + bias
        p = jax.nn.softmax(s, axis=-1)
        ctx = jnp.einsum("bhqk,bhkd->bhqd", p, v).transpose(0, 2, 1, 3).reshape(B, S, H)
        h = ln(ctx @ lp["wo"] + lp["bo"] + h, lp["ln1_g"], lp["ln1_b"])
        ff = jax.nn.gelu(h @ lp["w1"] + lp["b1"], approximate=True) @ lp["w2"] + lp["b2"]
        h = ln(ff + h, lp["ln2_g"], lp["ln2_b"])
    return h[:, 0]


# ----------------------------------------------------------------------------

if __name__ == "__main__":
    B, S = 2, 8
    key = jax.random.PRNGKey(0)
    k_params, k_ids, k_types = jax.random.split(key, 3)

    params = init_params(k_params, CFG)
    packed = pack_params(params, CFG)          # one-time packing, hoisted out of forward

    input_ids = jax.random.randint(k_ids, (B, S), 0, CFG["vocab_size"], jnp.int32)
    token_type_ids = jax.random.randint(k_types, (B, S), 0, CFG["type_vocab_size"], jnp.int32)
    # second sequence has 2 padding positions
    attention_mask = jnp.array([[1] * S, [1] * (S - 2) + [0, 0]], dtype=jnp.int32)

    out = simcse_forward(params, packed, input_ids, attention_mask, token_type_ids, CFG)
    out = jax.block_until_ready(out)
    assert out.shape == (B, CFG["hidden"]), out.shape

    ref = _ref_forward(params, input_ids, attention_mask, token_type_ids, CFG)
    np.testing.assert_allclose(np.asarray(out), np.asarray(ref), atol=2e-2, rtol=2e-2)

    print("KERNEL_OK")
</pallas_src>

<mosaic_0001>
module attributes {stable_mosaic.version = 11 : i64} {
  func.func @_encoder_kernel(%arg0: i32, %arg1: i32, %arg2: memref<2x8x32xf32, #tpu.memory_space<vmem>>, %arg3: memref<2x8xf32, #tpu.memory_space<vmem>>, %arg4: memref<1x32xf32, #tpu.memory_space<vmem>>, %arg5: memref<1x32xf32, #tpu.memory_space<vmem>>, %arg6: memref<6x32x16xbf16, #tpu.memory_space<vmem>>, %arg7: memref<6x1x16xf32, #tpu.memory_space<vmem>>, %arg8: memref<2x16x32xbf16, #tpu.memory_space<vmem>>, %arg9: memref<1x1x32xf32, #tpu.memory_space<vmem>>, %arg10: memref<1x1x32xf32, #tpu.memory_space<vmem>>, %arg11: memref<1x1x32xf32, #tpu.memory_space<vmem>>, %arg12: memref<1x32x64xbf16, #tpu.memory_space<vmem>>, %arg13: memref<1x1x64xf32, #tpu.memory_space<vmem>>, %arg14: memref<1x64x32xbf16, #tpu.memory_space<vmem>>, %arg15: memref<1x1x32xf32, #tpu.memory_space<vmem>>, %arg16: memref<1x1x32xf32, #tpu.memory_space<vmem>>, %arg17: memref<1x1x32xf32, #tpu.memory_space<vmem>>, %arg18: memref<2x32xf32, #tpu.memory_space<vmem>>, %arg19: memref<16x32xf32, #tpu.memory_space<vmem>>) attributes {dimension_semantics = [#tpu.dimension_semantics<parallel>, #tpu.dimension_semantics<arbitrary>], iteration_bounds = array<i64: 1, 2>, scalar_prefetch = 0 : i64, scratch_operands = 1 : i64, tpu.core_type = #tpu.core_type<tc>, window_params = [{transform_indices = @transform_0, window_bounds = array<i64: 2, 8, 32>}, {transform_indices = @transform_1, window_bounds = array<i64: 2, 8>}, {pipeline_mode = #tpu.pipeline_mode<synchronous>, transform_indices = @transform_2, window_bounds = array<i64: 1, 32>}, {pipeline_mode = #tpu.pipeline_mode<synchronous>, transform_indices = @transform_3, window_bounds = array<i64: 1, 32>}, {transform_indices = @transform_4, window_bounds = array<i64: 6, 32, 16>}, {transform_indices = @transform_5, window_bounds = array<i64: 6, 1, 16>}, {transform_indices = @transform_6, window_bounds = array<i64: 2, 16, 32>}, {transform_indices = @transform_7, window_bounds = array<i64: 1, 1, 32>}, {transform_indices = @transform_8, window_bounds = array<i64: 1, 1, 32>}, {transform_indices = @transform_9, window_bounds = array<i64: 1, 1, 32>}, {transform_indices = @transform_10, window_bounds = array<i64: 1, 32, 64>}, {transform_indices = @transform_11, window_bounds = array<i64: 1, 1, 64>}, {transform_indices = @transform_12, window_bounds = array<i64: 1, 64, 32>}, {transform_indices = @transform_13, window_bounds = array<i64: 1, 1, 32>}, {transform_indices = @transform_14, window_bounds = array<i64: 1, 1, 32>}, {transform_indices = @transform_15, window_bounds = array<i64: 1, 1, 32>}, {transform_indices = @transform_16, window_bounds = array<i64: 2, 32>}]} {
    %c0_i32 = arith.constant 0 : i32
    %0 = arith.cmpi eq, %arg1, %c0_i32 : i32
    %1 = arith.extui %0 : i1 to i32
    %c0_i32_0 = arith.constant 0 : i32
    %2 = arith.cmpi ne, %1, %c0_i32_0 : i32
    scf.if %2 {
      %c0_105 = arith.constant 0 : index
      %c0_106 = arith.constant 0 : index
      %c0_107 = arith.constant 0 : index
      %199 = vector.load %arg2[%c0_105, %c0_106, %c0_107] : memref<2x8x32xf32, #tpu.memory_space<vmem>>, vector<2x8x32xf32>
      %200 = vector.shape_cast %199 : vector<2x8x32xf32> to vector<16x32xf32>
      %c0_108 = arith.constant 0 : index
      %c0_109 = arith.constant 0 : index
      %201 = vector.load %arg4[%c0_108, %c0_109] : memref<1x32xf32, #tpu.memory_space<vmem>>, vector<1x32xf32>
      %c0_110 = arith.constant 0 : index
      %c0_111 = arith.constant 0 : index
      %202 = vector.load %arg5[%c0_110, %c0_111] : memref<1x32xf32, #tpu.memory_space<vmem>>, vector<1x32xf32>
      %cst_112 = arith.constant dense<0.000000e+00> : vector<16xf32>
      %203 = vector.multi_reduction <add>, %200, %cst_112 [1] : vector<16x32xf32> to vector<16xf32>
      %204 = vector.shape_cast %203 : vector<16xf32> to vector<16x1xf32>
      %cst_113 = arith.constant 3.200000e+01 : f32
      %205 = vector.broadcast %cst_113 : f32 to vector<16x1xf32>
      %206 = arith.divf %204, %205 : vector<16x1xf32>
      %207 = vector.broadcast %206 : vector<16x1xf32> to vector<16x32xf32>
      %208 = arith.subf %200, %207 : vector<16x32xf32>
      %209 = arith.mulf %208, %208 : vector<16x32xf32>
      %cst_114 = arith.constant dense<0.000000e+00> : vector<16xf32>
      %210 = vector.multi_reduction <add>, %209, %cst_114 [1] : vector<16x32xf32> to vector<16xf32>
      %211 = vector.shape_cast %210 : vector<16xf32> to vector<16x1xf32>
      %cst_115 = arith.constant 3.200000e+01 : f32
      %212 = vector.broadcast %cst_115 : f32 to vector<16x1xf32>
      %213 = arith.divf %211, %212 : vector<16x1xf32>
      %214 = vector.broadcast %206 : vector<16x1xf32> to vector<16x32xf32>
      %215 = arith.subf %200, %214 : vector<16x32xf32>
      %cst_116 = arith.constant 9.99999996E-13 : f32
      %216 = vector.broadcast %cst_116 : f32 to vector<16x1xf32>
      %217 = arith.addf %213, %216 : vector<16x1xf32>
      %218 = math.rsqrt %217 : vector<16x1xf32>
      %219 = vector.broadcast %218 : vector<16x1xf32> to vector<16x32xf32>
      %220 = arith.mulf %215, %219 : vector<16x32xf32>
      %221 = vector.broadcast %201 : vector<1x32xf32> to vector<16x32xf32>
      %222 = arith.mulf %220, %221 : vector<16x32xf32>
      %223 = vector.broadcast %202 : vector<1x32xf32> to vector<16x32xf32>
      %224 = arith.addf %222, %223 : vector<16x32xf32>
      %c0_117 = arith.constant 0 : index
      %c0_118 = arith.constant 0 : index
      %225 = vector.load %arg19[%c0_117, %c0_118] : memref<16x32xf32, #tpu.memory_space<vmem>>, vector<16x32xf32>
      tpu.vector_store %arg19[%c0_117, %c0_118], %224 {strides = array<i32>} : memref<16x32xf32, #tpu.memory_space<vmem>>, vector<16x32xf32>,
    } else {
    }
    %c0 = arith.constant 0 : index
    %c0_1 = arith.constant 0 : index
    %3 = vector.load %arg19[%c0, %c0_1] : memref<16x32xf32, #tpu.memory_space<vmem>>, vector<16x32xf32>
    %4 = arith.truncf %3 : vector<16x32xf32> to vector<16x32xbf16>
    %c0_2 = arith.constant 0 : index
    %c0_3 = arith.constant 0 : index
    %5 = vector.load %arg3[%c0_2, %c0_3] : memref<2x8xf32, #tpu.memory_space<vmem>>, vector<2x8xf32>
    %cst = arith.constant 1.000000e+00 : f32
    %6 = vector.broadcast %cst : f32 to vector<2x8xf32>
    %7 = arith.subf %6, %5 : vector<2x8xf32>
    %cst_4 = arith.constant -1.000000e+09 : f32
    %8 = vector.broadcast %cst_4 : f32 to vector<2x8xf32>
    %9 = arith.mulf %7, %8 : vector<2x8xf32>
    %10 = vector.shape_cast %9 : vector<2x8xf32> to vector<2x1x8xf32>
    %cst_5 = arith.constant 0.000000e+00 : f32
    %11 = vector.broadcast %cst_5 : f32 to vector<16x32xf32>
    %c0_6 = arith.constant 0 : index
    %c0_7 = arith.constant 0 : index
    %c0_8 = arith.constant 0 : index
    %12 = vector.load %arg6[%c0_6, %c0_7, %c0_8] : memref<6x32x16xbf16, #tpu.memory_space<vmem>>, vector<1x32x16xbf16>
    %13 = vector.shape_cast %12 : vector<1x32x16xbf16> to vector<32x16xbf16>
    %cst_9 = arith.constant dense<0.000000e+00> : vector<16x16xf32>
    %14 = tpu.matmul %4, %13, %cst_9 {dimension_numbers = #tpu.dot_dimension_numbers<[1], [0], [0], [1], [0, 0, 1, 1], [], []>} : vector<16x32xbf16>, vector<32x16xbf16>, vector<16x16xf32> -> vector<16x16xf32>
    %c0_10 = arith.constant 0 : index
    %c0_11 = arith.constant 0 : index
    %c0_12 = arith.constant 0 : index
    %15 = vector.load %arg7[%c0_10, %c0_11, %c0_12] : memref<6x1x16xf32, #tpu.memory_space<vmem>>, vector<1x1x16xf32>
    %16 = vector.shape_cast %15 : vector<1x1x16xf32> to vector<1x16xf32>
    %17 = vector.broadcast %16 : vector<1x16xf32> to vector<16x16xf32>
    %18 = arith.addf %14, %17 : vector<16x16xf32>
    %c1 = arith.constant 1 : index
    %c0_13 = arith.constant 0 : index
    %c0_14 = arith.constant 0 : index
    %19 = vector.load %arg6[%c1, %c0_13, %c0_14] : memref<6x32x16xbf16, #tpu.memory_space<vmem>>, vector<1x32x16xbf16>
    %20 = vector.shape_cast %19 : vector<1x32x16xbf16> to vector<32x16xbf16>
    %cst_15 = arith.constant dense<0.000000e+00> : vector<16x16xf32>
    %21 = tpu.matmul %4, %20, %cst_15 {dimension_numbers = #tpu.dot_dimension_numbers<[1], [0], [0], [1], [0, 0, 1, 1], [], []>} : vector<16x32xbf16>, vector<32x16xbf16>, vector<16x16xf32> -> vector<16x16xf32>
    %c1_16 = arith.constant 1 : index
    %c0_17 = arith.constant 0 : index
    %c0_18 = arith.constant 0 : index
    %22 = vector.load %arg7[%c1_16, %c0_17, %c0_18] : memref<6x1x16xf32, #tpu.memory_space<vmem>>, vector<1x1x16xf32>
    %23 = vector.shape_cast %22 : vector<1x1x16xf32> to vector<1x16xf32>
    %24 = vector.broadcast %23 : vector<1x16xf32> to vector<16x16xf32>
    %25 = arith.addf %21, %24 : vector<16x16xf32>
    %c2 = arith.constant 2 : index
    %c0_19 = arith.constant 0 : index
    %c0_20 = arith.constant 0 : index
    %26 = vector.load %arg6[%c2, %c0_19, %c0_20] : memref<6x32x16xbf16, #tpu.memory_space<vmem>>, vector<1x32x16xbf16>
    %27 = vector.shape_cast %26 : vector<1x32x16xbf16> to vector<32x16xbf16>
    %cst_21 = arith.constant dense<0.000000e+00> : vector<16x16xf32>
    %28 = tpu.matmul %4, %27, %cst_21 {dimension_numbers = #tpu.dot_dimension_numbers<[1], [0], [0], [1], [0, 0, 1, 1], [], []>} : vector<16x32xbf16>, vector<32x16xbf16>, vector<16x16xf32> -> vector<16x16xf32>
    %c2_22 = arith.constant 2 : index
    %c0_23 = arith.constant 0 : index
    %c0_24 = arith.constant 0 : index
    %29 = vector.load %arg7[%c2_22, %c0_23, %c0_24] : memref<6x1x16xf32, #tpu.memory_space<vmem>>, vector<1x1x16xf32>
    %30 = vector.shape_cast %29 : vector<1x1x16xf32> to vector<1x16xf32>
    %31 = vector.broadcast %30 : vector<1x16xf32> to vector<16x16xf32>
    %32 = arith.addf %28, %31 : vector<16x16xf32>
    %33 = vector.shape_cast %18 : vector<16x16xf32> to vector<2x8x16xf32>
    %34 = arith.truncf %33 : vector<2x8x16xf32> to vector<2x8x16xbf16>
    %35 = vector.shape_cast %25 : vector<16x16xf32> to vector<2x8x16xf32>
    %36 = arith.truncf %35 : vector<2x8x16xf32> to vector<2x8x16xbf16>
    %37 = vector.shape_cast %32 : vector<16x16xf32> to vector<2x8x16xf32>
    %38 = arith.truncf %37 : vector<2x8x16xf32> to vector<2x8x16xbf16>
    "tpu.trace_start"() <{level = 10 : i32, message = "bqd,bkd->bqk"}> : () -> ()
    %cst_25 = arith.constant dense<0.000000e+00> : vector<2x8x8xf32>
    %39 = tpu.matmul %34, %36, %cst_25 {dimension_numbers = #tpu.dot_dimension_numbers<[2], [2], [1], [1], [0, 0, 0, 1, 1, 1], [0], [0]>} : vector<2x8x16xbf16>, vector<2x8x16xbf16>, vector<2x8x8xf32> -> vector<2x8x8xf32>
    "tpu.trace_stop"() : () -> ()
    %40 = vector.broadcast %10 : vector<2x1x8xf32> to vector<2x8x8xf32>
    %41 = arith.addf %39, %40 : vector<2x8x8xf32>
    %cst_26 = arith.constant dense<0xFF800000> : vector<2x8xf32>
    %42 = vector.multi_reduction <maximumf>, %41, %cst_26 [2] : vector<2x8x8xf32> to vector<2x8xf32>
    %43 = vector.shape_cast %42 : vector<2x8xf32> to vector<2x8x1xf32>
    %44 = vector.broadcast %43 : vector<2x8x1xf32> to vector<2x8x8xf32>
    %45 = arith.subf %41, %44 : vector<2x8x8xf32>
    %46 = math.exp %45 : vector<2x8x8xf32>
    %cst_27 = arith.constant dense<0.000000e+00> : vector<2x8xf32>
    %47 = vector.multi_reduction <add>, %46, %cst_27 [2] : vector<2x8x8xf32> to vector<2x8xf32>
    %48 = vector.shape_cast %47 : vector<2x8xf32> to vector<2x8x1xf32>
    %49 = tpu.reciprocal %48 {approx = true} : vector<2x8x1xf32> -> vector<2x8x1xf32>
    %50 = vector.broadcast %49 : vector<2x8x1xf32> to vector<2x8x8xf32>
    %51 = arith.mulf %46, %50 : vector<2x8x8xf32>
    %52 = arith.truncf %51 : vector<2x8x8xf32> to vector<2x8x8xbf16>
    "tpu.trace_start"() <{level = 10 : i32, message = "bqk,bkd->bqd"}> : () -> ()
    %cst_28 = arith.constant dense<0.000000e+00> : vector<2x8x16xf32>
    %53 = tpu.matmul %52, %38, %cst_28 {dimension_numbers = #tpu.dot_dimension_numbers<[2], [1], [1], [2], [0, 0, 0, 1, 1, 2], [0], [0]>} : vector<2x8x8xbf16>, vector<2x8x16xbf16>, vector<2x8x16xf32> -> vector<2x8x16xf32>
    "tpu.trace_stop"() : () -> ()
    %54 = vector.shape_cast %53 : vector<2x8x16xf32> to vector<16x16xf32>
    %55 = arith.truncf %54 : vector<16x16xf32> to vector<16x16xbf16>
    %c0_29 = arith.constant 0 : index
    %c0_30 = arith.constant 0 : index
    %c0_31 = arith.constant 0 : index
    %56 = vector.load %arg8[%c0_29, %c0_30, %c0_31] : memref<2x16x32xbf16, #tpu.memory_space<vmem>>, vector<1x16x32xbf16>
    %57 = vector.shape_cast %56 : vector<1x16x32xbf16> to vector<16x32xbf16>
    %cst_32 = arith.constant dense<0.000000e+00> : vector<16x32xf32>
    %58 = tpu.matmul %55, %57, %cst_32 {dimension_numbers = #tpu.dot_dimension_numbers<[1], [0], [0], [1], [0, 0, 1, 1], [], []>} : vector<16x16xbf16>, vector<16x32xbf16>, vector<16x32xf32> -> vector<16x32xf32>
    %59 = arith.addf %11, %58 : vector<16x32xf32>
    %c3 = arith.constant 3 : index
    %c0_33 = arith.constant 0 : index
    %c0_34 = arith.constant 0 : index
    %60 = vector.load %arg6[%c3, %c0_33, %c0_34] : memref<6x32x16xbf16, #tpu.memory_space<vmem>>, vector<1x32x16xbf16>
    %61 = vector.shape_cast %60 : vector<1x32x16xbf16> to vector<32x16xbf16>
    %cst_35 = arith.constant dense<0.000000e+00> : vector<16x16xf32>
    %62 = tpu.matmul %4, %61, %cst_35 {dimension_numbers = #tpu.dot_dimension_numbers<[1], [0], [0], [1], [0, 0, 1, 1], [], []>} : vector<16x32xbf16>, vector<32x16xbf16>, vector<16x16xf32> -> vector<16x16xf32>
    %c3_36 = arith.constant 3 : index
    %c0_37 = arith.constant 0 : index
    %c0_38 = arith.constant 0 : index
    %63 = vector.load %arg7[%c3_36, %c0_37, %c0_38] : memref<6x1x16xf32, #tpu.memory_space<vmem>>, vector<1x1x16xf32>
    %64 = vector.shape_cast %63 : vector<1x1x16xf32> to vector<1x16xf32>
    %65 = vector.broadcast %64 : vector<1x16xf32> to vector<16x16xf32>
    %66 = arith.addf %62, %65 : vector<16x16xf32>
    %c4 = arith.constant 4 : index
    %c0_39 = arith.constant 0 : index
    %c0_40 = arith.constant 0 : index
    %67 = vector.load %arg6[%c4, %c0_39, %c0_40] : memref<6x32x16xbf16, #tpu.memory_space<vmem>>, vector<1x32x16xbf16>
    %68 = vector.shape_cast %67 : vector<1x32x16xbf16> to vector<32x16xbf16>
    %cst_41 = arith.constant dense<0.000000e+00> : vector<16x16xf32>
    %69 = tpu.matmul %4, %68, %cst_41 {dimension_numbers = #tpu.dot_dimension_numbers<[1], [0], [0], [1], [0, 0, 1, 1], [], []>} : vector<16x32xbf16>, vector<32x16xbf16>, vector<16x16xf32> -> vector<16x16xf32>
    %c4_42 = arith.constant 4 : index
    %c0_43 = arith.constant 0 : index
    %c0_44 = arith.constant 0 : index
    %70 = vector.load %arg7[%c4_42, %c0_43, %c0_44] : memref<6x1x16xf32, #tpu.memory_space<vmem>>, vector<1x1x16xf32>
    %71 = vector.shape_cast %70 : vector<1x1x16xf32> to vector<1x16xf32>
    %72 = vector.broadcast %71 : vector<1x16xf32> to vector<16x16xf32>
    %73 = arith.addf %69, %72 : vector<16x16xf32>
    %c5 = arith.constant 5 : index
    %c0_45 = arith.constant 0 : index
    %c0_46 = arith.constant 0 : index
    %74 = vector.load %arg6[%c5, %c0_45, %c0_46] : memref<6x32x16xbf16, #tpu.memory_space<vmem>>, vector<1x32x16xbf16>
    %75 = vector.shape_cast %74 : vector<1x32x16xbf16> to vector<32x16xbf16>
    %cst_47 = arith.constant dense<0.000000e+00> : vector<16x16xf32>
    %76 = tpu.matmul %4, %75, %cst_47 {dimension_numbers = #tpu.dot_dimension_numbers<[1], [0], [0], [1], [0, 0, 1, 1], [], []>} : vector<16x32xbf16>, vector<32x16xbf16>, vector<16x16xf32> -> vector<16x16xf32>
    %c5_48 = arith.constant 5 : index
    %c0_49 = arith.constant 0 : index
    %c0_50 = arith.constant 0 : index
    %77 = vector.load %arg7[%c5_48, %c0_49, %c0_50] : memref<6x1x16xf32, #tpu.memory_space<vmem>>, vector<1x1x16xf32>
    %78 = vector.shape_cast %77 : vector<1x1x16xf32> to vector<1x16xf32>
    %79 = vector.broadcast %78 : vector<1x16xf32> to vector<16x16xf32>
    %80 = arith.addf %76, %79 : vector<16x16xf32>
    %81 = vector.shape_cast %66 : vector<16x16xf32> to vector<2x8x16xf32>
    %82 = arith.truncf %81 : vector<2x8x16xf32> to vector<2x8x16xbf16>
    %83 = vector.shape_cast %73 : vector<16x16xf32> to vector<2x8x16xf32>
    %84 = arith.truncf %83 : vector<2x8x16xf32> to vector<2x8x16xbf16>
    %85 = vector.shape_cast %80 : vector<16x16xf32> to vector<2x8x16xf32>
    %86 = arith.truncf %85 : vector<2x8x16xf32> to vector<2x8x16xbf16>
    "tpu.trace_start"() <{level = 10 : i32, message = "bqd,bkd->bqk"}> : () -> ()
    %cst_51 = arith.constant dense<0.000000e+00> : vector<2x8x8xf32>
    %87 = tpu.matmul %82, %84, %cst_51 {dimension_numbers = #tpu.dot_dimension_numbers<[2], [2], [1], [1], [0, 0, 0, 1, 1, 1], [0], [0]>} : vector<2x8x16xbf16>, vector<2x8x16xbf16>, vector<2x8x8xf32> -> vector<2x8x8xf32>
    "tpu.trace_stop"() : () -> ()
    %88 = vector.broadcast %10 : vector<2x1x8xf32> to vector<2x8x8xf32>
    %89 = arith.addf %87, %88 : vector<2x8x8xf32>
    %cst_52 = arith.constant dense<0xFF800000> : vector<2x8xf32>
    %90 = vector.multi_reduction <maximumf>, %89, %cst_52 [2] : vector<2x8x8xf32> to vector<2x8xf32>
    %91 = vector.shape_cast %90 : vector<2x8xf32> to vector<2x8x1xf32>
    %92 = vector.broadcast %91 : vector<2x8x1xf32> to vector<2x8x8xf32>
    %93 = arith.subf %89, %92 : vector<2x8x8xf32>
    %94 = math.exp %93 : vector<2x8x8xf32>
    %cst_53 = arith.constant dense<0.000000e+00> : vector<2x8xf32>
    %95 = vector.multi_reduction <add>, %94, %cst_53 [2] : vector<2x8x8xf32> to vector<2x8xf32>
    %96 = vector.shape_cast %95 : vector<2x8xf32> to vector<2x8x1xf32>
    %97 = tpu.reciprocal %96 {approx = true} : vector<2x8x1xf32> -> vector<2x8x1xf32>
    %98 = vector.broadcast %97 : vector<2x8x1xf32> to vector<2x8x8xf32>
    %99 = arith.mulf %94, %98 : vector<2x8x8xf32>
    %100 = arith.truncf %99 : vector<2x8x8xf32> to vector<2x8x8xbf16>
    "tpu.trace_start"() <{level = 10 : i32, message = "bqk,bkd->bqd"}> : () -> ()
    %cst_54 = arith.constant dense<0.000000e+00> : vector<2x8x16xf32>
    %101 = tpu.matmul %100, %86, %cst_54 {dimension_numbers = #tpu.dot_dimension_numbers<[2], [1], [1], [2], [0, 0, 0, 1, 1, 2], [0], [0]>} : vector<2x8x8xbf16>, vector<2x8x16xbf16>, vector<2x8x16xf32> -> vector<2x8x16xf32>
    "tpu.trace_stop"() : () -> ()
    %102 = vector.shape_cast %101 : vector<2x8x16xf32> to vector<16x16xf32>
    %103 = arith.truncf %102 : vector<16x16xf32> to vector<16x16xbf16>
    %c1_55 = arith.constant 1 : index
    %c0_56 = arith.constant 0 : index
    %c0_57 = arith.constant 0 : index
    %104 = vector.load %arg8[%c1_55, %c0_56, %c0_57] : memref<2x16x32xbf16, #tpu.memory_space<vmem>>, vector<1x16x32xbf16>
    %105 = vector.shape_cast %104 : vector<1x16x32xbf16> to vector<16x32xbf16>
    %cst_58 = arith.constant dense<0.000000e+00> : vector<16x32xf32>
    %106 = tpu.matmul %103, %105, %cst_58 {dimension_numbers = #tpu.dot_dimension_numbers<[1], [0], [0], [1], [0, 0, 1, 1], [], []>} : vector<16x16xbf16>, vector<16x32xbf16>, vector<16x32xf32> -> vector<16x32xf32>
    %107 = arith.addf %59, %106 : vector<16x32xf32>
    %c0_59 = arith.constant 0 : index
    %c0_60 = arith.constant 0 : index
    %c0_61 = arith.constant 0 : index
    %108 = vector.load %arg9[%c0_59, %c0_60, %c0_61] : memref<1x1x32xf32, #tpu.memory_space<vmem>>, vector<1x1x32xf32>
    %109 = vector.shape_cast %108 : vector<1x1x32xf32> to vector<1x32xf32>
    %110 = vector.broadcast %109 : vector<1x32xf32> to vector<16x32xf32>
    %111 = arith.addf %107, %110 : vector<16x32xf32>
    %112 = arith.addf %111, %3 : vector<16x32xf32>
    %c0_62 = arith.constant 0 : index
    %c0_63 = arith.constant 0 : index
    %c0_64 = arith.constant 0 : index
    %113 = vector.load %arg10[%c0_62, %c0_63, %c0_64] : memref<1x1x32xf32, #tpu.memory_space<vmem>>, vector<1x1x32xf32>
    %114 = vector.shape_cast %113 : vector<1x1x32xf32> to vector<1x32xf32>
    %c0_65 = arith.constant 0 : index
    %c0_66 = arith.constant 0 : index
    %c0_67 = arith.constant 0 : index
    %115 = vector.load %arg11[%c0_65, %c0_66, %c0_67] : memref<1x1x32xf32, #tpu.memory_space<vmem>>, vector<1x1x32xf32>
    %116 = vector.shape_cast %115 : vector<1x1x32xf32> to vector<1x32xf32>
    %cst_68 = arith.constant dense<0.000000e+00> : vector<16xf32>
    %117 = vector.multi_reduction <add>, %112, %cst_68 [1] : vector<16x32xf32> to vector<16xf32>
    %118 = vector.shape_cast %117 : vector<16xf32> to vector<16x1xf32>
    %cst_69 = arith.constant 3.200000e+01 : f32
    %119 = vector.broadcast %cst_69 : f32 to vector<16x1xf32>
    %120 = arith.divf %118, %119 : vector<16x1xf32>
    %121 = vector.broadcast %120 : vector<16x1xf32> to vector<16x32xf32>
    %122 = arith.subf %112, %121 : vector<16x32xf32>
    %123 = arith.mulf %122, %122 : vector<16x32xf32>
    %cst_70 = arith.constant dense<0.000000e+00> : vector<16xf32>
    %124 = vector.multi_reduction <add>, %123, %cst_70 [1] : vector<16x32xf32> to vector<16xf32>
    %125 = vector.shape_cast %124 : vector<16xf32> to vector<16x1xf32>
    %cst_71 = arith.constant 3.200000e+01 : f32
    %126 = vector.broadcast %cst_71 : f32 to vector<16x1xf32>
    %127 = arith.divf %125, %126 : vector<16x1xf32>
    %128 = vector.broadcast %120 : vector<16x1xf32> to vector<16x32xf32>
    %129 = arith.subf %112, %128 : vector<16x32xf32>
    %cst_72 = arith.constant 9.99999996E-13 : f32
    %130 = vector.broadcast %cst_72 : f32 to vector<16x1xf32>
    %131 = arith.addf %127, %130 : vector<16x1xf32>
    %132 = math.rsqrt %131 : vector<16x1xf32>
    %133 = vector.broadcast %132 : vector<16x1xf32> to vector<16x32xf32>
    %134 = arith.mulf %129, %133 : vector<16x32xf32>
    %135 = vector.broadcast %114 : vector<1x32xf32> to vector<16x32xf32>
    %136 = arith.mulf %134, %135 : vector<16x32xf32>
    %137 = vector.broadcast %116 : vector<1x32xf32> to vector<16x32xf32>
    %138 = arith.addf %136, %137 : vector<16x32xf32>
    %139 = arith.truncf %138 : vector<16x32xf32> to vector<16x32xbf16>
    %c0_73 = arith.constant 0 : index
    %c0_74 = arith.constant 0 : index
    %c0_75 = arith.constant 0 : index
    %140 = vector.load %arg12[%c0_73, %c0_74, %c0_75] : memref<1x32x64xbf16, #tpu.memory_space<vmem>>, vector<1x32x64xbf16>
    %141 = vector.shape_cast %140 : vector<1x32x64xbf16> to vector<32x64xbf16>
    %cst_76 = arith.constant dense<0.000000e+00> : vector<16x64xf32>
    %142 = tpu.matmul %139, %141, %cst_76 {dimension_numbers = #tpu.dot_dimension_numbers<[1], [0], [0], [1], [0, 0, 1, 1], [], []>} : vector<16x32xbf16>, vector<32x64xbf16>, vector<16x64xf32> -> vector<16x64xf32>
    %c0_77 = arith.constant 0 : index
    %c0_78 = arith.constant 0 : index
    %c0_79 = arith.constant 0 : index
    %143 = vector.load %arg13[%c0_77, %c0_78, %c0_79] : memref<1x1x64xf32, #tpu.memory_space<vmem>>, vector<1x1x64xf32>
    %144 = vector.shape_cast %143 : vector<1x1x64xf32> to vector<1x64xf32>
    %145 = vector.broadcast %144 : vector<1x64xf32> to vector<16x64xf32>
    %146 = arith.addf %142, %145 : vector<16x64xf32>
    %147 = arith.mulf %146, %146 : vector<16x64xf32>
    %148 = arith.mulf %146, %147 : vector<16x64xf32>
    %cst_80 = arith.constant 4.471500e-02 : f32
    %149 = vector.broadcast %cst_80 : f32 to vector<16x64xf32>
    %150 = arith.mulf %149, %148 : vector<16x64xf32>
    %151 = arith.addf %146, %150 : vector<16x64xf32>
    %cst_81 = arith.constant 0.797884583 : f32
    %152 = vector.broadcast %cst_81 : f32 to vector<16x64xf32>
    %153 = arith.mulf %152, %151 : vector<16x64xf32>
    %154 = math.tanh %153 : vector<16x64xf32>
    %cst_82 = arith.constant 1.000000e+00 : f32
    %155 = vector.broadcast %cst_82 : f32 to vector<16x64xf32>
    %156 = arith.addf %155, %154 : vector<16x64xf32>
    %cst_83 = arith.constant 5.000000e-01 : f32
    %157 = vector.broadcast %cst_83 : f32 to vector<16x64xf32>
    %158 = arith.mulf %157, %156 : vector<16x64xf32>
    %159 = arith.mulf %146, %158 : vector<16x64xf32>
    %160 = arith.truncf %159 : vector<16x64xf32> to vector<16x64xbf16>
    %c0_84 = arith.constant 0 : index
    %c0_85 = arith.constant 0 : index
    %c0_86 = arith.constant 0 : index
    %161 = vector.load %arg14[%c0_84, %c0_85, %c0_86] : memref<1x64x32xbf16, #tpu.memory_space<vmem>>, vector<1x64x32xbf16>
    %162 = vector.shape_cast %161 : vector<1x64x32xbf16> to vector<64x32xbf16>
    %cst_87 = arith.constant dense<0.000000e+00> : vector<16x32xf32>
    %163 = tpu.matmul %160, %162, %cst_87 {dimension_numbers = #tpu.dot_dimension_numbers<[1], [0], [0], [1], [0, 0, 1, 1], [], []>} : vector<16x64xbf16>, vector<64x32xbf16>, vector<16x32xf32> -> vector<16x32xf32>
    %c0_88 = arith.constant 0 : index
    %c0_89 = arith.constant 0 : index
    %c0_90 = arith.constant 0 : index
    %164 = vector.load %arg15[%c0_88, %c0_89, %c0_90] : memref<1x1x32xf32, #tpu.memory_space<vmem>>, vector<1x1x32xf32>
    %165 = vector.shape_cast %164 : vector<1x1x32xf32> to vector<1x32xf32>
    %166 = vector.broadcast %165 : vector<1x32xf32> to vector<16x32xf32>
    %167 = arith.addf %163, %166 : vector<16x32xf32>
    %168 = arith.addf %167, %138 : vector<16x32xf32>
    %c0_91 = arith.constant 0 : index
    %c0_92 = arith.constant 0 : index
    %c0_93 = arith.constant 0 : index
    %169 = vector.load %arg16[%c0_91, %c0_92, %c0_93] : memref<1x1x32xf32, #tpu.memory_space<vmem>>, vector<1x1x32xf32>
    %170 = vector.shape_cast %169 : vector<1x1x32xf32> to vector<1x32xf32>
    %c0_94 = arith.constant 0 : index
    %c0_95 = arith.constant 0 : index
    %c0_96 = arith.constant 0 : index
    %171 = vector.load %arg17[%c0_94, %c0_95, %c0_96] : memref<1x1x32xf32, #tpu.memory_space<vmem>>, vector<1x1x32xf32>
    %172 = vector.shape_cast %171 : vector<1x1x32xf32> to vector<1x32xf32>
    %cst_97 = arith.constant dense<0.000000e+00> : vector<16xf32>
    %173 = vector.multi_reduction <add>, %168, %cst_97 [1] : vector<16x32xf32> to vector<16xf32>
    %174 = vector.shape_cast %173 : vector<16xf32> to vector<16x1xf32>
    %cst_98 = arith.constant 3.200000e+01 : f32
    %175 = vector.broadcast %cst_98 : f32 to vector<16x1xf32>
    %176 = arith.divf %174, %175 : vector<16x1xf32>
    %177 = vector.broadcast %176 : vector<16x1xf32> to vector<16x32xf32>
    %178 = arith.subf %168, %177 : vector<16x32xf32>
    %179 = arith.mulf %178, %178 : vector<16x32xf32>
    %cst_99 = arith.constant dense<0.000000e+00> : vector<16xf32>
    %180 = vector.multi_reduction <add>, %179, %cst_99 [1] : vector<16x32xf32> to vector<16xf32>
    %181 = vector.shape_cast %180 : vector<16xf32> to vector<16x1xf32>
    %cst_100 = arith.constant 3.200000e+01 : f32
    %182 = vector.broadcast %cst_100 : f32 to vector<16x1xf32>
    %183 = arith.divf %181, %182 : vector<16x1xf32>
    %184 = vector.broadcast %176 : vector<16x1xf32> to vector<16x32xf32>
    %185 = arith.subf %168, %184 : vector<16x32xf32>
    %cst_101 = arith.constant 9.99999996E-13 : f32
    %186 = vector.broadcast %cst_101 : f32 to vector<16x1xf32>
    %187 = arith.addf %183, %186 : vector<16x1xf32>
    %188 = math.rsqrt %187 : vector<16x1xf32>
    %189 = vector.broadcast %188 : vector<16x1xf32> to vector<16x32xf32>
    %190 = arith.mulf %185, %189 : vector<16x32xf32>
    %191 = vector.broadcast %170 : vector<1x32xf32> to vector<16x32xf32>
    %192 = arith.mulf %190, %191 : vector<16x32xf32>
    %193 = vector.broadcast %172 : vector<1x32xf32> to vector<16x32xf32>
    %194 = arith.addf %192, %193 : vector<16x32xf32>
    %c0_102 = arith.constant 0 : index
    %c0_103 = arith.constant 0 : index
    %195 = vector.load %arg19[%c0_102, %c0_103] : memref<16x32xf32, #tpu.memory_space<vmem>>, vector<16x32xf32>
    tpu.vector_store %arg19[%c0_102, %c0_103], %194 {strides = array<i32>} : memref<16x32xf32, #tpu.memory_space<vmem>>, vector<16x32xf32>,
    %c1_i32 = arith.constant 1 : i32
    %196 = arith.cmpi eq, %arg1, %c1_i32 : i32
    %197 = arith.extui %196 : i1 to i32
    %c0_i32_104 = arith.constant 0 : i32
    %198 = arith.cmpi ne, %197, %c0_i32_104 : i32
    scf.if %198 {
      %199 = vector.shape_cast %194 : vector<16x32xf32> to vector<2x8x32xf32>
      %200 = vector.extract_strided_slice %199 {offsets = [0, 0, 0], sizes = [2, 1, 32], strides = [1, 1, 1]} : vector<2x8x32xf32> to vector<2x1x32xf32>
      %201 = vector.shape_cast %200 : vector<2x1x32xf32> to vector<2x32xf32>
      %c0_105 = arith.constant 0 : index
      %c0_106 = arith.constant 0 : index
      %202 = vector.load %arg18[%c0_105, %c0_106] : memref<2x32xf32, #tpu.memory_space<vmem>>, vector<2x32xf32>
      tpu.vector_store %arg18[%c0_105, %c0_106], %201 {strides = array<i32>} : memref<2x32xf32, #tpu.memory_space<vmem>>, vector<2x32xf32>,
    } else {
    }
    return
  }
  func.func @transform_0(%arg0: i32, %arg1: i32) -> (i32, i32, i32) {
    %c0_i32 = arith.constant 0 : i32
    %c0_i32_0 = arith.constant 0 : i32
    %c0_i32_1 = arith.constant 0 : i32
    return %arg0, %c0_i32, %c0_i32_0 : i32, i32, i32
  }
  func.func @transform_1(%arg0: i32, %arg1: i32) -> (i32, i32) {
    %c0_i32 = arith.constant 0 : i32
    %c0_i32_0 = arith.constant 0 : i32
    return %arg0, %c0_i32 : i32, i32
  }
  func.func @transform_2(%arg0: i32, %arg1: i32) -> (i32, i32) {
    %c0_i32 = arith.constant 0 : i32
    %c0_i32_0 = arith.constant 0 : i32
    %c0_i32_1 = arith.constant 0 : i32
    return %c0_i32, %c0_i32_0 : i32, i32
  }
  func.func @transform_3(%arg0: i32, %arg1: i32) -> (i32, i32) {
    %c0_i32 = arith.constant 0 : i32
    %c0_i32_0 = arith.constant 0 : i32
    %c0_i32_1 = arith.constant 0 : i32
    return %c0_i32, %c0_i32_0 : i32, i32
  }
  func.func @transform_4(%arg0: i32, %arg1: i32) -> (i32, i32, i32) {
    %c0_i32 = arith.constant 0 : i32
    %c0_i32_0 = arith.constant 0 : i32
    %c0_i32_1 = arith.constant 0 : i32
    return %arg1, %c0_i32, %c0_i32_0 : i32, i32, i32
  }
  func.func @transform_5(%arg0: i32, %arg1: i32) -> (i32, i32, i32) {
    %c0_i32 = arith.constant 0 : i32
    %c0_i32_0 = arith.constant 0 : i32
    %c0_i32_1 = arith.constant 0 : i32
    return %arg1, %c0_i32, %c0_i32_0 : i32, i32, i32
  }
  func.func @transform_6(%arg0: i32, %arg1: i32) -> (i32, i32, i32) {
    %c0_i32 = arith.constant 0 : i32
    %c0_i32_0 = arith.constant 0 : i32
    %c0_i32_1 = arith.constant 0 : i32
    return %arg1, %c0_i32, %c0_i32_0 : i32, i32, i32
  }
  func.func @transform_7(%arg0: i32, %arg1: i32) -> (i32, i32, i32) {
    %c0_i32 = arith.constant 0 : i32
    %c0_i32_0 = arith.constant 0 : i32
    %c0_i32_1 = arith.constant 0 : i32
    return %arg1, %c0_i32, %c0_i32_0 : i32, i32, i32
  }
  func.func @transform_8(%arg0: i32, %arg1: i32) -> (i32, i32, i32) {
    %c0_i32 = arith.constant 0 : i32
    %c0_i32_0 = arith.constant 0 : i32
    %c0_i32_1 = arith.constant 0 : i32
    return %arg1, %c0_i32, %c0_i32_0 : i32, i32, i32
  }
  func.func @transform_9(%arg0: i32, %arg1: i32) -> (i32, i32, i32) {
    %c0_i32 = arith.constant 0 : i32
    %c0_i32_0 = arith.constant 0 : i32
    %c0_i32_1 = arith.constant 0 : i32
    return %arg1, %c0_i32, %c0_i32_0 : i32, i32, i32
  }
  func.func @transform_10(%arg0: i32, %arg1: i32) -> (i32, i32, i32) {
    %c0_i32 = arith.constant 0 : i32
    %c0_i32_0 = arith.constant 0 : i32
    %c0_i32_1 = arith.constant 0 : i32
    return %arg1, %c0_i32, %c0_i32_0 : i32, i32, i32
  }
  func.func @transform_11(%arg0: i32, %arg1: i32) -> (i32, i32, i32) {
    %c0_i32 = arith.constant 0 : i32
    %c0_i32_0 = arith.constant 0 : i32
    %c0_i32_1 = arith.constant 0 : i32
    return %arg1, %c0_i32, %c0_i32_0 : i32, i32, i32
  }
  func.func @transform_12(%arg0: i32, %arg1: i32) -> (i32, i32, i32) {
    %c0_i32 = arith.constant 0 : i32
    %c0_i32_0 = arith.constant 0 : i32
    %c0_i32_1 = arith.constant 0 : i32
    return %arg1, %c0_i32, %c0_i32_0 : i32, i32, i32
  }
  func.func @transform_13(%arg0: i32, %arg1: i32) -> (i32, i32, i32) {
    %c0_i32 = arith.constant 0 : i32
    %c0_i32_0 = arith.constant 0 : i32
    %c0_i32_1 = arith.constant 0 : i32
    return %arg1, %c0_i32, %c0_i32_0 : i32, i32, i32
  }
  func.func @transform_14(%arg0: i32, %arg1: i32) -> (i32, i32, i32) {
    %c0_i32 = arith.constant 0 : i32
    %c0_i32_0 = arith.constant 0 : i32
    %c0_i32_1 = arith.constant 0 : i32
    return %arg1, %c0_i32, %c0_i32_0 : i32, i32, i32
  }
  func.func @transform_15(%arg0: i32, %arg1: i32) -> (i32, i32, i32) {
    %c0_i32 = arith.constant 0 : i32
    %c0_i32_0 = arith.constant 0 : i32
    %c0_i32_1 = arith.constant 0 : i32
    return %arg1, %c0_i32, %c0_i32_0 : i32, i32, i32
  }
  func.func @transform_16(%arg0: i32, %arg1: i32) -> (i32, i32) {
    %c0_i32 = arith.constant 0 : i32
    %c0_i32_0 = arith.constant 0 : i32
    return %arg0, %c0_i32 : i32, i32
  }
}

</mosaic_0001>

<bundles_post_ra>
// kernel: tpu_custom_call.1
= control target key start
LH: loop header
LB: loop body
LE: loop exit
PB: predicated region body
PF: predicated region fallthrough
CT: control target
= control target key end

     0   :  { %s2434_s0 = inlined_call_operand.vmem [shape: f32[2,8,32], index: 0, kind: input, shape index: {}]   ;;  %s2435_s1 = inlined_call_operand.vmem [shape: f32[2,8], index: 1, kind: input, shape index: {}]   ;;  %s2436_s2 = inlined_call_operand.vmem [shape: f32[1,32], index: 2, kind: input, shape index: {}]   ;;  %s2437_s3 = inlined_call_operand.vmem [shape: f32[1,32], index: 3, kind: input, shape index: {}]   ;;  %s2438_s4 = inlined_call_operand.vmem [shape: bf16[12,32,16], index: 4, kind: input, shape index: {}]   ;;  %s2439_s5 = inlined_call_operand.vmem [shape: f32[12,1,16], index: 5, kind: input, shape index: {}]   ;;  %s2440_s6 = inlined_call_operand.vmem [shape: bf16[4,16,32], index: 6, kind: input, shape index: {}]   ;;  %s2441_s7 = inlined_call_operand.vmem [shape: f32[2,1,32], index: 7, kind: input, shape index: {}]   ;;  %s2442_s8 = inlined_call_operand.vmem [shape: f32[2,1,32], index: 8, kind: input, shape index: {}]   ;;  %s2443_s9 = inlined_call_operand.vmem [shape: f32[2,1,32], index: 9, kind: input, shape index: {}]   ;;  %s2444_s10 = inlined_call_operand.vmem [shape: bf16[2,32,64], index: 10, kind: input, shape index: {}]   ;;  %s2445_s11 = inlined_call_operand.vmem [shape: f32[2,1,64], index: 11, kind: input, shape index: {}]   ;;  %s2446_s12 = inlined_call_operand.vmem [shape: bf16[2,64,32], index: 12, kind: input, shape index: {}]   ;;  %s2447_s13 = inlined_call_operand.vmem [shape: f32[2,1,32], index: 13, kind: input, shape index: {}]   ;;  %s2448_s14 = inlined_call_operand.vmem [shape: f32[2,1,32], index: 14, kind: input, shape index: {}]   ;;  %s2449_s15 = inlined_call_operand.vmem [shape: f32[2,1,32], index: 15, kind: input, shape index: {}]   ;;  %s2450_s16 = inlined_call_operand.hbm [shape: f32[2,32], index: 16, kind: output, shape index: {}]  }
   0x1   :  { %2455 = sst [smem:[#allocation10_spill]] %s2434_s0 }
   0x2   :  { %2456 = sst [smem:[#allocation11_spill]] %s2438_s4 }
   0x3   :  { %2457 = sst [smem:[#allocation12_spill]] %s2439_s5 }
   0x4   :  { %2458 = sst [smem:[#allocation13_spill]] %s2440_s6 }
   0x5   :  { %2459 = sst [smem:[#allocation14_spill]] %s2441_s7 }
   0x6   :  { %2460 = sst [smem:[#allocation15_spill]] %s2444_s10 }
   0x7   :  { %2461 = sst [smem:[#allocation16_spill]] %s2450_s16 }
   0x8   :  { %21 = vsyncpa [#allocation4], 0  ;;  %s2173_s21 = smov 0   ;;  %s2175_s22 = smov 0  }
   0x9   :  { %s2177_s23 = smov 0  }
   0xa LB: > { %2462 = sst [smem:[#allocation6_spill]] %s2079_s22  ;;  %s36_s25 = sadd.s32 1, %s2079_s22  ;;  %s2083_s23 = sphi %s2177_s23, %s27_s23   ;;  %s2079_s22 = sphi %s2175_s22, %s2482_s22   ;;  %s2075_s21 = sphi %s2173_s21, %s2481_s21  }
   0xb   : > { %2463 = sst [smem:[#allocation7_spill]] %s2083_s23  ;;  %p37_p0 = scmp.ge.s32.totalorder %s36_s25, 2 }
   0xc   : > { %p1780_p1 = scmp.ge.s32.totalorder %s2083_s23, 1  ;;  %p595_p2 = scmp.lt.s32.totalorder %s2083_s23, 3 }
   0xd   : > { %s2484_s25 = smov (%p37_p0, %s36_s25), 0 }
   0xe   : > { %2464 = sst [smem:[#allocation8_spill]] %s2484_s25  ;;  %p596_p3 = pnand %p1780_p1, %p595_p2 }
  0x10   : > { %599 = sbr.rel (%p596_p3) target bundleno = 2400 (0x960), region = 84 }
  0x15   : > { %s701_s26 = smul.u32 6, %s2075_s21  ;;  %s1783_s27 = sshll.u32 %s2075_s21, 1 }
  0x16   : > { %p714_p4 = scmp.lt.s32.totalorder %s1783_s27, 3  ;;  %p720_p6 = scmp.lt.s32.totalorder %s2075_s21, 1 }
  0x17   : > { %p702_p5 = scmp.lt.s32.totalorder %s701_s26, 11  ;;  %s2465_s5 = sld [smem:[#allocation12_spill]] }
  0x18   : > { %s2486_s27 = smov (!%p714_p4, %s1783_s27), 3  ;;  %s2466_s4 = sld [smem:[#allocation11_spill]] }
  0x19   : > { %s2488_s26 = smov (!%p702_p5, %s701_s26), 11  ;;  %s1922_s28 = sshll.u32 %s2486_s27, 3 }
  0x1a   : > { %s1921_s29 = sshll.u32 %s2488_s26, 4  ;;  %s2467_s6 = sld [smem:[#allocation13_spill]] }
  0x1b   : > { %s2213_s16 = scalar_select %p720_p6, %s2075_s21, 1 }
  0x1c   : > { %s2470_s10 = sld [smem:[#allocation15_spill]]  ;;  %p1790_p7 = scmp.ne.s32.totalorder %s2075_s21, 0 }
  0x1d   : > { %s2200_s17 = scalar_lea.vmem %s2465_s5, %s2488_s26  ;;  %s1923_s18 = sshll.u32 %s2213_s16, 4 }
  0x1e   : > { %s2205_s20 = scalar_lea.vmem %s2466_s4, %s1921_s29  ;;  %s744_s29 = scalar_lea.vmem %s2447_s13, %s2213_s16 }
  0x1f   : > { %s747_s19 = scalar_lea.vmem %s2448_s14, %s2213_s16  ;;  %755 = sbr.rel (%p1790_p7) target bundleno = 319 (0x13f), region = 88 }
  0x20   : > { %s2210_s22 = scalar_lea.vmem %s2467_s6, %s1922_s28  ;;  %s736_s6 = scalar_lea.vmem %s2445_s11, %s2213_s16 }
  0x21   : > { %2468 = sst [smem:[#allocation9_spill]] %s2210_s22  ;;  %s1924_s22 = sshll.u32 %s2213_s16, 5 }
  0x22   : > { %s2231_s27 = scalar_lea.vmem %s2470_s10, %s1923_s18  ;;  %s2245_s25 = scalar_lea.vmem %s2446_s12, %s1924_s22 }
  0x23   : > { %s750_s10 = scalar_lea.vmem %s2449_s15, %s2213_s16  ;;  %s2471_s7 = sld [smem:[#allocation10_spill]] (!%p1790_p7) }
  0x24   : > { %vm760_vm0 = vcmask 261120   ;;  %v2085_v4 = vmov 32.0   ;;  %v1978_v35 = vld [vmem:[%s2436_s2] ss:$0 sm:$0xff] }
  0x25   : > { %1980 = vrcp.f32 %v2085_v4  ;;  %v1979_v38 = vld [vmem:[%s2437_s3] ss:$0 sm:$0xff] }
  0x29   : > { %v756_v0 = vld [vmem:[%s2471_s7] sm:$0xff]  ;;  %v757_v2 = vld [vmem:[%s2471_s7 + $0x8] sm:$0xff] }
  0x2a   : > { %v761_v1 = vsel %vm760_vm0, %v756_v0, 0.0  ;;  %v764_v3 = vsel %vm760_vm0, %v757_v2, 0.0 }
  0x2b   : > { %762 = vadd.xlane.f32.xlu0 %v761_v1  ;;  %v1981_v5 = vpop.eup %1980 }
  0x2c   : > { %v768_v6 = vmul.f32 32.0, %v1981_v5  ;;  %vm772_vm1 = vweird.f32 %v1981_v5 }
  0x2e   : > { %v769_v7 = vsub.f32 1.0, %v768_v6 }
  0x30   : > { %v770_v8 = vmul.f32 %v1981_v5, %v769_v7 }
  0x32   : > { %v771_v9 = vadd.f32 %v1981_v5, %v770_v8 }
  0x33   : > { %765 = vadd.xlane.f32.xlu0 %v764_v3 }
  0x34   : > { %v773_v10 = vsel %vm772_vm1, %v1981_v5, %v771_v9 }
  0x9e   : > { %v763_v11 = vpop.xlane.xlu0 %762 }
  0x9f   : > { %v774_v12 = vmul.f32 %v773_v10, %v763_v11 }
  0xa1   : > { %v776_v13 = vsub.f32 %v756_v0, %v774_v12 }
  0xa3   : > { %v778_v14 = vmul.f32 %v776_v13, %v776_v13 }
  0xa5   : > { %v780_v15 = vsel %vm760_vm0, %v778_v14, 0.0 }
  0xa6   : > { %781 = vadd.xlane.f32.xlu1 %v780_v15  ;;  %v766_v16 = vpop.xlane.xlu0 %765 }
  0xa7   : > { %v775_v17 = vmul.f32 %v773_v10, %v766_v16 }
  0xa9   : > { %v777_v18 = vsub.f32 %v757_v2, %v775_v17 }
  0xab   : > { %v779_v19 = vmul.f32 %v777_v18, %v777_v18 }
  0xad   : > { %v783_v20 = vsel %vm760_vm0, %v779_v19, 0.0 }
  0xae   : > { %784 = vadd.xlane.f32.xlu1 %v783_v20 }
 0x119   : > { %v782_v21 = vpop.xlane.xlu1 %781 }
 0x11a   : > { %v786_v22 = vmul.f32 %v782_v21, %v773_v10 }
 0x11c   : > { %v788_v23 = vadd.f32 1e-12, %v786_v22 }
 0x11e   : > { %1982 = vrsqrt.f32 %v788_v23  ;;  %vm796_vm3 = vweird.f32 %v788_v23 }
 0x121   : > { %v785_v24 = vpop.xlane.xlu1 %784 }
 0x122   : > { %v787_v25 = vmul.f32 %v785_v24, %v773_v10 }
 0x124   : > { %v1983_v26 = vpop.eup %1982  ;;  %v789_v27 = vadd.f32 1e-12, %v787_v25 }
 0x125   : > { %v791_v28 = vmul.f32 %v1983_v26, %v788_v23  ;;  %vm797_vm2 = vweird.f32 %v1983_v26 }
 0x126   : > { %1984 = vrsqrt.f32 %v789_v27  ;;  %vm798_vm4 = vmor %vm796_vm3, %vm797_vm2  ;;  %vm806_vm6 = vweird.f32 %v789_v27 }
 0x127   : > { %v792_v29 = vmul.f32 %v1983_v26, %v791_v28 }
 0x129   : > { %v793_v30 = vmul.f32 0.5, %v792_v29 }
 0x12b   : > { %v794_v31 = vsub.f32 1.5, %v793_v30 }
 0x12c   : > { %v1985_v32 = vpop.eup %1984 }
 0x12d   : > { %v795_v33 = vmul.f32 %v1983_v26, %v794_v31  ;;  %v801_v34 = vmul.f32 %v1985_v32, %v789_v27  ;;  %vm807_vm5 = vweird.f32 %v1985_v32 }
 0x12e   : > { %vm808_vm7 = vmor %vm806_vm6, %vm807_vm5 }
 0x12f   : > { %v799_v36 = vsel %vm798_vm4, %v1983_v26, %v795_v33  ;;  %v802_v37 = vmul.f32 %v1985_v32, %v801_v34 }
 0x130   : > { %v810_v39 = vmul.f32 %v799_v36, %v776_v13 }
 0x131   : > { %v803_v40 = vmul.f32 0.5, %v802_v37 }
 0x132   : > { %v815_v41 = vmul.f32 %v1978_v35, %v810_v39 }
 0x133   : > { %v804_v42 = vsub.f32 1.5, %v803_v40 }
 0x134   : > { %v820_v43 = vadd.f32 %v1979_v38, %v815_v41 }
 0x135   : > { %v805_v44 = vmul.f32 %v1985_v32, %v804_v42 }
 0x136   : > { %822 = vst.msk [vmem:[#allocation2] sm:$0xff] %vm760_vm0, %v820_v43 }
 0x137   : > { %v809_v45 = vsel %vm808_vm7, %v1985_v32, %v805_v44 }
 0x138   : > { %v811_v46 = vmul.f32 %v809_v45, %v777_v18 }
 0x13a   : > { %v816_v47 = vmul.f32 %v1978_v35, %v811_v46 }
 0x13c   : > { %v821_v48 = vadd.f32 %v1979_v38, %v816_v47 }
 0x13e   : > { %823 = vst.msk [vmem:[#allocation2 + $0x8] sm:$0xff] %vm760_vm0, %v821_v48 }
 0x13f PF: > { %v1928_v49 = vld [vmem:[%s2205_s20 + $0x18] sm:$0xff]  ;;  %v1927_v50 = vld [vmem:[%s2205_s20 + $0x10] sm:$0xff]  ;;  %v2276_v51 = vld [vmem:[#allocation2] sm:$0xff]  ;;  %vm852_vm8 = vcmask 261120   ;;  %vm952_vm9 = vcmask 130048   ;;  %vm991_vm10 = vcmask 64512   ;;  %s2475_s24 = scalar_lea.vmem %s2442_s8, %s2213_s16  ;;  %s2476_s28 = scalar_lea.vmem %s2443_s9, %s2213_s16 }
 0x140   : > { %v1926_v53 = vld [vmem:[%s2205_s20 + $0x8] sm:$0xff]  ;;  %898 = vmatpush.bf16.msra.mxu1 %v1928_v49  ;;  %v1925_v54 = vld [vmem:[%s2205_s20] sm:$0xff]  ;;  %v1933_v25 = vld [vmem:[%s2205_s20 + $0x38] sm:$0xff]  ;;  %vm1019_vm11 = vcmask 1043456   ;;  %s2472_s4 = sld [smem:[#allocation9_spill]]  ;;  %vm1486_vm3 = vcmask 523264  }
 0x141   : > { %862 = vmatpush.bf16.msra.mxu0 %v1926_v53  ;;  %v1986_v56 = vld [vmem:[%s2200_s17 + $0x1] ss:$0 sm:$0xff]  ;;  %v1987_v59 = vld [vmem:[%s2200_s17] ss:$0 sm:$0xff]  ;;  %v1930_v8 = vld [vmem:[%s2205_s20 + $0x28] sm:$0xff]  ;;  %s2473_s5 = sld [smem:[#allocation14_spill]] }
 0x142   : > { %934 = vmatpush.bf16.msra.mxu2 %v1930_v8  ;;  %v1929_v9 = vld [vmem:[%s2205_s20 + $0x20] sm:$0xff]  ;;  %v1935_v24 = vld [vmem:[%s2205_s20 + $0x48] sm:$0xff]  ;;  %v1932_v27 = vld [vmem:[%s2205_s20 + $0x30] sm:$0xff]  ;;  %p1916_p8 = scmp.ne.s32.totalorder %s2075_s21, 1 }
 0x143   : > { %v827_v10 = vld [vmem:[%s2435_s1] sm:$0x3]  ;;  %v1988_v28 = vld [vmem:[%s2200_s17 + $0x2] ss:$0 sm:$0xff]  ;;  %v1989_v48 = vld [vmem:[%s2200_s17 + $0x4] ss:$0 sm:$0xff] }
 0x144   : > { %899 = vmatpush.bf16.msra.mxu1 %v1927_v50  ;;  %v828_v11 = vsub.f32 1.0, %v827_v10  ;;  %v1934_v26 = vld [vmem:[%s2205_s20 + $0x40] sm:$0xff] }
 0x145   : > { %v2278_v52 = vld [vmem:[#allocation2 + $0x8] sm:$0xff]  ;;  %863 = vmatpush.bf16.msra.mxu0 %v1925_v54 }
 0x146   : > { %v2284_v55 = vpack.c.bf16 %v2278_v52, %v2276_v51  ;;  %935 = vmatpush.bf16.msra.mxu2 %v1929_v9  ;;  %v2303_v12 = vmul.f32 -1e+09, %v828_v11  ;;  %v1931_v10 = vld [vmem:[%s2472_s4] sm:$0xff] }
 0x147   : > { %s2474_s22 = scalar_lea.vmem %s2473_s5, %s2213_s16 }
 0x148   : > { %1813 = vmatmul.msk.bf16.vlgmr.msra.gmra.mxu1 %vm852_vm8, %v2284_v55  ;;  %1799 = vmatmul.msk.bf16.vlgmr.msra.gmra.mxu0 %vm852_vm8, %v2284_v55  ;;  %v831_v13 = vrot.slane %v2303_v12, 1  ;;  %v948_v14 = vperm.slane %v2303_v12, 0 }
 0x149   : > { %1827 = vmatmul.msk.bf16.vlgmr.msra.gmra.mxu2 %vm852_vm8, %v2284_v55 }
 0x14a   : > { %v2307_v15 = vperm.slane %v831_v13, 0 }
 0x1c5   : > { %v901_v57 = vpop.f32.mrf.mxu1  ;;  %v865_v60 = vpop.f32.mrf.mxu0 }
 0x1c6   : > { %v902_v58 = vadd.f32 %v1986_v56, %v901_v57  ;;  %v866_v63 = vadd.f32 %v1987_v59, %v865_v60  ;;  %v1990_v60 = vld [vmem:[%s2200_s17 + $0x3] ss:$0 sm:$0xff] }
 0x1c8   : > { %v944_v61 = vpack.c.bf16 %v902_v58, %v902_v58  ;;  %v942_v1 = vpack.c.bf16 %v866_v63, %v866_v63 }
 0x1ca   : > { %v957_v62 = vsel %vm952_vm9, %v944_v61, 0 }
 0x1cb   : > { %966 = vmatpush.bf16.xpose.msra.mxu3 %v957_v62 }
 0x1cc   : > { %v937_v29 = vpop.f32.mrf.mxu2 }
 0x1cd   : > { %v903_v0 = vpop.f32.mrf.mxu1  ;;  %v867_v4 = vpop.f32.mrf.mxu0  ;;  %v938_v31 = vadd.f32 %v1988_v28, %v937_v29  ;;  %v1991_v29 = vld [vmem:[%s2200_s17 + $0x5] ss:$0 sm:$0xff] }
 0x1ce   : > { %v904_v2 = vadd.f32 %v1986_v56, %v903_v0  ;;  %v868_v6 = vadd.f32 %v1987_v59, %v867_v4 }
 0x1cf   : > { %v946_v34 = vpack.c.bf16 %v938_v31, %v938_v31 }
 0x1d0   : > { %v945_v3 = vpack.c.bf16 %v904_v2, %v904_v2  ;;  %v943_v7 = vpack.c.bf16 %v868_v6, %v868_v6 }
 0x1d1   : > { %v1021_v37 = vsel %vm1019_vm11, %v946_v34, 0 }
 0x1d2   : > { %1828 = vmatmul.msk.bf16.vlgmr.msra.gmra.mxu3 %vm952_vm9, %v942_v1  ;;  %v976_v5 = vsel %vm952_vm9, %v945_v3, 0  ;;  %1030 = vmatpush.bf16.msrb.mxu1 %v1021_v37 }
 0x1d3   : > { %985 = vmatpush.bf16.xpose.msrb.mxu0 %v976_v5  ;;  %1086 = vmatpush.bf16.msrb.mxu3 %v1933_v25 }
 0x1d4   : > { %v939_v39 = vpop.f32.mrf.mxu2 }
 0x1d5   : > { %v940_v40 = vadd.f32 %v1988_v28, %v939_v39 }
 0x1d7   : > { %1087 = vmatpush.bf16.msrb.mxu3 %v1932_v27  ;;  %v947_v41 = vpack.c.bf16 %v940_v40, %v940_v40 }
 0x1d9   : > { %v1040_v44 = vsel %vm1019_vm11, %v947_v41, 0 }
 0x1da   : > { %1829 = vmatmul.msk.bf16.vlgmr.msrb.gmra.mxu0 %vm952_vm9, %v943_v7  ;;  %1049 = vmatpush.bf16.msrb.mxu2 %v1040_v44 }
 0x1db   : > { %1122 = vmatpush.bf16.msra.mxu0 %v1935_v24 }
 0x1df   : > { %1123 = vmatpush.bf16.msra.mxu0 %v1934_v26 }
 0x1e2   : > { %1845 = vmatmul.msk.bf16.vlgmr.msrb.gmra.mxu3 %vm852_vm8, %v2284_v55 }
 0x1ea   : > { %1859 = vmatmul.msk.bf16.vlgmr.msra.gmra.mxu0 %vm852_vm8, %v2284_v55 }
 0x255   : > { %v968_v16 = vpop.f32.mrf.mxu3 }
 0x256   : > { %v969_v17 = vadd.f32 %v968_v16, %v948_v14 }
 0x257   : > { %v987_v18 = vpop.f32.mrf.mxu0 }
 0x258   : > { %v988_v19 = vadd.f32 %v987_v18, %v2307_v15  ;;  %v992_v20 = vsel %vm991_vm10, %v969_v17, -inf  ;;  %v1936_v18 = vld [vmem:[%s2205_s20 + $0x50] sm:$0xff] }
 0x259   : > { %993 = vmax.xlane.f32.xlu1 %v992_v20 }
 0x25a   : > { %v995_v21 = vsel %vm991_vm10, %v988_v19, -inf }
 0x25b   : > { %996 = vmax.xlane.f32.xlu0 %v995_v21 }
 0x25d   : > { %v970_v22 = vpop.f32.mrf.mxu3 }
 0x25f   : > { %v989_v23 = vpop.f32.mrf.mxu0 }
 0x265   : > { %v1089_v50 = vpop.f32.mrf.mxu3 }
 0x266   : > { %v1090_v8 = vadd.f32 %v1990_v60, %v1089_v50 }
 0x267   : > { %v1125_v47 = vpop.f32.mrf.mxu0 }
 0x268   : > { %v1126_v53 = vadd.f32 %v1989_v48, %v1125_v47  ;;  %v1166_v9 = vpack.c.bf16 %v1090_v8, %v1090_v8 }
 0x26a   : > { %v1168_v56 = vpack.c.bf16 %v1126_v53, %v1126_v53 }
 0x26c   : > { %v1176_v58 = vsel %vm952_vm9, %v1168_v56, 0 }
 0x26d   : > { %1185 = vmatpush.bf16.xpose.msra.mxu2 %v1176_v58  ;;  %v1091_v61 = vpop.f32.mrf.mxu3 }
 0x26e   : > { %v1092_v62 = vadd.f32 %v1990_v60, %v1091_v61 }
 0x26f   : > { %v1127_v49 = vpop.f32.mrf.mxu0 }
 0x270   : > { %v1128_v54 = vadd.f32 %v1989_v48, %v1127_v49  ;;  %v1167_v63 = vpack.c.bf16 %v1092_v62, %v1092_v62  ;;  %v1992_v62 = vld [vmem:[%s2474_s22] ss:$0 sm:$0xff] }
 0x272   : > { %v1169_v57 = vpack.c.bf16 %v1128_v54, %v1128_v54  ;;  %v1938_v54 = vld [vmem:[%s2472_s4 + $0x8] sm:$0xff] }
 0x274   : > { %v1195_v59 = vsel %vm952_vm9, %v1169_v57, 0 }
 0x275   : > { %1204 = vmatpush.bf16.xpose.msra.mxu3 %v1195_v59 }
 0x27c   : > { %1875 = vmatmul.msk.bf16.vlgmr.msra.gmra.mxu3 %vm952_vm9, %v1167_v63 }
 0x27d   : > { %1315 = vmatpush.bf16.msrb.mxu3 %v1931_v10  ;;  %v2086_v10 = vmov 32.0  }
 0x2cc   : > { %v994_v30 = vpop.xlane.xlu1 %993 }
 0x2cd   : > { %v998_v32 = vsub.f32 %v969_v17, %v994_v30  ;;  %v1937_v17 = vld [vmem:[%s2205_s20 + $0x58] sm:$0xff] }
 0x2ce   : > { %v997_v33 = vpop.xlane.xlu0 %996  ;;  %1158 = vmatpush.bf16.msra.mxu1 %v1937_v17 }
 0x2cf   : > { %v1000_v35 = vmul.f32 1.442695, %v998_v32  ;;  %v999_v36 = vsub.f32 %v988_v19, %v997_v33 }
 0x2d1   : > { %1999 = vpow2.f32 %v1000_v35  ;;  %v1002_v38 = vmul.f32 1.442695, %v999_v36 }
 0x2d2   : > { %1159 = vmatpush.bf16.msra.mxu1 %v1936_v18 }
 0x2d3   : > { %2001 = vpow2.f32 %v1002_v38 }
 0x2d7   : > { %v2000_v42 = vpop.eup %1999 }
 0x2d8   : > { %v1004_v43 = vsel %vm991_vm10, %v2000_v42, 0.0 }
 0x2d9   : > { %v2002_v45 = vpop.eup %2001  ;;  %1005 = vadd.xlane.f32.xlu1 %v1004_v43 }
 0x2da   : > { %v1007_v46 = vsel %vm991_vm10, %v2002_v45, 0.0 }
 0x2db   : > { %1008 = vadd.xlane.f32.xlu0 %v1007_v46 }
 0x2ff   : > { %v1206_v11 = vpop.f32.mrf.mxu3 }
 0x300   : > { %v1207_v26 = vadd.f32 %v1206_v11, %v2307_v15 }
 0x302   : > { %v1213_v28 = vsel %vm991_vm10, %v1207_v26, -inf }
 0x307   : > { %v1208_v13 = vpop.f32.mrf.mxu3 }
 0x34c   : > { %v1006_v0 = vpop.xlane.xlu1 %1005 }
 0x34d   : > { %2003 = vrcp.f32 %v1006_v0 }
 0x34e   : > { %v1009_v1 = vpop.xlane.xlu0 %1008 }
 0x34f   : > { %2005 = vrcp.f32 %v1009_v1 }
 0x353   : > { %v2004_v2 = vpop.eup %2003 }
 0x354   : > { %v1012_v3 = vmul.f32 %v2004_v2, %v2000_v42 }
 0x355   : > { %v2006_v4 = vpop.eup %2005 }
 0x356   : > { %v1013_v5 = vmul.f32 %v2006_v4, %v2002_v45  ;;  %v1014_v6 = vpack.c.bf16 %v1012_v3, %v1012_v3 }
 0x358   : > { %1830 = vmatmul.msk.bf16.vlgmr.msrb.gmra.mxu1 %vm991_vm10, %v1014_v6  ;;  %v1015_v7 = vpack.c.bf16 %v1013_v5, %v1013_v5 }
 0x35a   : > { %1831 = vmatmul.msk.bf16.vlgmr.msrb.gmra.mxu2 %vm991_vm10, %v1015_v7 }
 0x35b   : > { %1292 = vmatpush.bf16.msrb.mxu2 %v1938_v54 }
 0x368   : > { %1873 = vmatmul.msk.bf16.vlgmr.msra.gmra.mxu1 %vm852_vm8, %v2284_v55 }
 0x36a   : > { %1874 = vmatmul.msk.bf16.vlgmr.msra.gmra.mxu2 %vm952_vm9, %v1166_v9 }
 0x3d5   : > { %v1032_v16 = vpop.f32.mrf.mxu1 }
 0x3dd   : > { %v1034_v19 = vpop.f32.mrf.mxu1  ;;  %v1051_v20 = vpop.f32.mrf.mxu2 }
 0x3de   : > { %v1055_v21 = vpack.c.bf16 %v1051_v20, %v1032_v16 }
 0x3e0   : > { %1889 = vmatmul.msk.bf16.vlgmr.msrb.gmra.mxu3 %vm952_vm9, %v1055_v21 }
 0x3e5   : > { %v1053_v22 = vpop.f32.mrf.mxu2  ;;  %v1161_v30 = vpop.f32.mrf.mxu1 }
 0x3e6   : > { %v1162_v31 = vadd.f32 %v1991_v29, %v1161_v30 }
 0x3e8   : > { %v1170_v32 = vpack.c.bf16 %v1162_v31, %v1162_v31 }
 0x3ea   : > { %v1238_v55 = vsel %vm1019_vm11, %v1170_v32, 0  ;;  %v1939_v32 = vld [vmem:[%s2231_s27] sm:$0xff] }
 0x3eb   : > { %1247 = vmatpush.bf16.msrb.mxu0 %v1238_v55 }
 0x3ed   : > { %v1187_v23 = vpop.f32.mrf.mxu2 }
 0x3ee   : > { %v1188_v24 = vadd.f32 %v1187_v23, %v948_v14  ;;  %v1163_v14 = vpop.f32.mrf.mxu1 }
 0x3ef   : > { %v1164_v35 = vadd.f32 %v1991_v29, %v1163_v14 }
 0x3f0   : > { %v1210_v25 = vsel %vm991_vm10, %v1188_v24, -inf }
 0x3f1   : > { %1211 = vmax.xlane.f32.xlu2 %v1210_v25  ;;  %v1171_v36 = vpack.c.bf16 %v1164_v35, %v1164_v35 }
 0x3f3   : > { %v1257_v15 = vsel %vm1019_vm11, %v1171_v36, 0 }
 0x3f4   : > { %1266 = vmatpush.bf16.msrb.mxu1 %v1257_v15 }
 0x3f5   : > { %v1189_v27 = vpop.f32.mrf.mxu2 }
 0x3f9   : > { %1214 = vmax.xlane.f32.xlu2 %v1213_v28  ;;  %v1940_v28 = vld [vmem:[%s2231_s27 + $0x8] sm:$0xff] }
 0x3fa   : > { %1423 = vmatpush.bf16.msra.mxu0 %v1940_v28 }
 0x3fe   : > { %1424 = vmatpush.bf16.msra.mxu0 %v1939_v32 }
 0x463   : > { %v1317_v61 = vpop.f32.mrf.mxu3 }
 0x464   : > { %v1212_v33 = vpop.xlane.xlu2 %1211 }
 0x465   : > { %v1216_v34 = vsub.f32 %v1188_v24, %v1212_v33 }
 0x467   : > { %v1218_v12 = vmul.f32 1.442695, %v1216_v34 }
 0x469   : > { %2007 = vpow2.f32 %v1218_v12 }
 0x46b   : > { %v1319_v4 = vpop.f32.mrf.mxu3 }
 0x46c   : > { %v1215_v37 = vpop.xlane.xlu2 %1214 }
 0x46d   : > { %v1217_v38 = vsub.f32 %v1207_v26, %v1215_v37 }
 0x46f   : > { %v2008_v39 = vpop.eup %2007  ;;  %v1220_v40 = vmul.f32 1.442695, %v1217_v38 }
 0x470   : > { %v1222_v41 = vsel %vm991_vm10, %v2008_v39, 0.0 }
 0x471   : > { %2009 = vpow2.f32 %v1220_v40  ;;  %1223 = vadd.xlane.f32.xlu0 %v1222_v41 }
 0x477   : > { %v2010_v42 = vpop.eup %2009 }
 0x478   : > { %v1225_v43 = vsel %vm991_vm10, %v2010_v42, 0.0 }
 0x479   : > { %1226 = vadd.xlane.f32.xlu1 %v1225_v43 }
 0x4e4   : > { %v1224_v44 = vpop.xlane.xlu0 %1223 }
 0x4e5   : > { %2011 = vrcp.f32 %v1224_v44  ;;  %v1993_v44 = vld [vmem:[%s2475_s24] ss:$0 sm:$0xff] }
 0x4eb   : > { %v2012_v45 = vpop.eup %2011 }
 0x4ec   : > { %v1230_v46 = vmul.f32 %v2012_v45, %v2008_v39  ;;  %v1227_v47 = vpop.xlane.xlu1 %1226 }
 0x4ed   : > { %2013 = vrcp.f32 %v1227_v47 }
 0x4ee   : > { %v1232_v48 = vpack.c.bf16 %v1230_v46, %v1230_v46  ;;  %2015 = vrcp.f32 %v2086_v10 }
 0x4f0   : > { %1876 = vmatmul.msk.bf16.vlgmr.msrb.gmra.mxu0 %vm991_vm10, %v1232_v48  ;;  %v1994_v48 = vld [vmem:[%s2476_s28] ss:$0 sm:$0xff] }
 0x4f3   : > { %v2014_v49 = vpop.eup %2013 }
 0x4f4   : > { %v1231_v50 = vmul.f32 %v2014_v49, %v2010_v42  ;;  %v2016_v11 = vpop.eup %2015 }
 0x4f5   : > { %v1339_v13 = vmul.f32 32.0, %v2016_v11  ;;  %vm1343_vm12 = vweird.f32 %v2016_v11 }
 0x4f6   : > { %v1233_v53 = vpack.c.bf16 %v1231_v50, %v1231_v50 }
 0x4f7   : > { %v1340_v16 = vsub.f32 1.0, %v1339_v13 }
 0x4f8   : > { %1877 = vmatmul.msk.bf16.vlgmr.msrb.gmra.mxu1 %vm991_vm10, %v1233_v53 }
 0x4f9   : > { %v1341_v17 = vmul.f32 %v2016_v11, %v1340_v16 }
 0x56d   : > { %v1249_v56 = vpop.f32.mrf.mxu0 }
 0x575   : > { %v1251_v57 = vpop.f32.mrf.mxu0  ;;  %v1268_v58 = vpop.f32.mrf.mxu1 }
 0x576   : > { %v1272_v59 = vpack.c.bf16 %v1268_v58, %v1249_v56  ;;  %v1944_v58 = vld [vmem:[%s2245_s25 + $0x18] sm:$0xff] }
 0x577   : > { %1494 = vmatpush.bf16.msra.mxu1 %v1944_v58  ;;  %v1998_v58 = vld [vmem:[%s750_s10] ss:$0 sm:$0xff] }
 0x578   : > { %1884 = vmatmul.msk.bf16.vlgmr.msrb.gmra.mxu2 %vm952_vm9, %v1272_v59  ;;  %v1943_v59 = vld [vmem:[%s2245_s25 + $0x10] sm:$0xff] }
 0x57b   : > { %1495 = vmatpush.bf16.msra.mxu1 %v1943_v59 }
 0x57d   : > { %v1270_v60 = vpop.f32.mrf.mxu1 }
 0x57e   : > { %v1942_v60 = vld [vmem:[%s2245_s25 + $0x8] sm:$0xff] }
 0x57f   : > { %1496 = vmatpush.bf16.msra.mxu1 %v1942_v60 }
 0x5fb   : > { %v1294_v63 = vpop.f32.mrf.mxu2 }
 0x5fc   : > { %v1318_v0 = vadd.f32 %v1317_v61, %v1294_v63  ;;  %v1995_v61 = vld [vmem:[%s736_s6] ss:$0 sm:$0xff] }
 0x5fd   : > { %v1941_v63 = vld [vmem:[%s2245_s25] sm:$0xff] }
 0x5fe   : > { %v1326_v1 = vadd.f32 %v1992_v62, %v1318_v0  ;;  %1497 = vmatpush.bf16.msra.mxu1 %v1941_v63 }
 0x600   : > { %v1328_v2 = vadd.f32 %v1326_v1, %v2276_v51  ;;  %v1342_v51 = vadd.f32 %v2016_v11, %v1341_v17 }
 0x602   : > { %v1332_v3 = vsel %vm852_vm8, %v1328_v2, 0.0  ;;  %v2364_v18 = vsel %vm1343_vm12, %v2016_v11, %v1342_v51 }
 0x603   : > { %1333 = vadd.xlane.f32.xlu2 %v1332_v3  ;;  %v1296_v5 = vpop.f32.mrf.mxu2 }
 0x604   : > { %v1320_v6 = vadd.f32 %v1319_v4, %v1296_v5 }
 0x606   : > { %v1327_v7 = vadd.f32 %v1992_v62, %v1320_v6 }
 0x608   : > { %v1329_v8 = vadd.f32 %v1327_v7, %v2278_v52 }
 0x60a   : > { %v1335_v9 = vsel %vm852_vm8, %v1329_v8, 0.0 }
 0x60b   : > { %1336 = vadd.xlane.f32.xlu0 %v1335_v9 }
 0x676   : > { %v1334_v19 = vpop.xlane.xlu2 %1333 }
 0x677   : > { %v1345_v20 = vmul.f32 %v2364_v18, %v1334_v19 }
 0x679   : > { %v1347_v21 = vsub.f32 %v1328_v2, %v1345_v20 }
 0x67b   : > { %v1349_v52 = vmul.f32 %v1347_v21, %v1347_v21 }
 0x67d   : > { %v1351_v22 = vsel %vm852_vm8, %v1349_v52, 0.0 }
 0x67e   : > { %1352 = vadd.xlane.f32.xlu1 %v1351_v22  ;;  %v1337_v23 = vpop.xlane.xlu0 %1336 }
 0x67f   : > { %v1346_v24 = vmul.f32 %v2364_v18, %v1337_v23 }
 0x681   : > { %v1348_v25 = vsub.f32 %v1329_v8, %v1346_v24  ;;  %v1996_v24 = vld [vmem:[%s744_s29] ss:$0 sm:$0xff] }
 0x683   : > { %v1350_v26 = vmul.f32 %v1348_v25, %v1348_v25 }
 0x685   : > { %v1354_v27 = vsel %vm852_vm8, %v1350_v26, 0.0 }
 0x686   : > { %1355 = vadd.xlane.f32.xlu2 %v1354_v27 }
 0x6f1   : > { %v1353_v29 = vpop.xlane.xlu1 %1352 }
 0x6f2   : > { %v1357_v30 = vmul.f32 %v1353_v29, %v2364_v18 }
 0x6f4   : > { %v1359_v31 = vadd.f32 1e-12, %v1357_v30 }
 0x6f6   : > { %2017 = vrsqrt.f32 %v1359_v31  ;;  %vm1367_vm14 = vweird.f32 %v1359_v31 }
 0x6f9   : > { %v1356_v33 = vpop.xlane.xlu2 %1355 }
 0x6fa   : > { %v1358_v55 = vmul.f32 %v1356_v33, %v2364_v18 }
 0x6fc   : > { %v2018_v34 = vpop.eup %2017  ;;  %v1360_v12 = vadd.f32 1e-12, %v1358_v55 }
 0x6fd   : > { %v1362_v14 = vmul.f32 %v2018_v34, %v1359_v31  ;;  %vm1368_vm13 = vweird.f32 %v2018_v34 }
 0x6fe   : > { %2019 = vrsqrt.f32 %v1360_v12  ;;  %vm1369_vm15 = vmor %vm1367_vm14, %vm1368_vm13  ;;  %vm1377_vm1 = vweird.f32 %v1360_v12 }
 0x6ff   : > { %v1363_v35 = vmul.f32 %v2018_v34, %v1362_v14 }
 0x701   : > { %v1364_v36 = vmul.f32 0.5, %v1363_v35 }
 0x703   : > { %v1365_v37 = vsub.f32 1.5, %v1364_v36 }
 0x704   : > { %v2020_v15 = vpop.eup %2019 }
 0x705   : > { %v1366_v38 = vmul.f32 %v2018_v34, %v1365_v37  ;;  %v1372_v39 = vmul.f32 %v2020_v15, %v1360_v12  ;;  %vm1378_vm0 = vweird.f32 %v2020_v15 }
 0x706   : > { %vm1379_vm2 = vmor %vm1377_vm1, %vm1378_vm0 }
 0x707   : > { %v1373_v40 = vmul.f32 %v2020_v15, %v1372_v39  ;;  %v1370_v41 = vsel %vm1369_vm15, %v2018_v34, %v1366_v38 }
 0x708   : > { %v1381_v45 = vmul.f32 %v1370_v41, %v1347_v21 }
 0x709   : > { %v1374_v42 = vmul.f32 0.5, %v1373_v40 }
 0x70a   : > { %v1386_v49 = vmul.f32 %v1993_v44, %v1381_v45 }
 0x70b   : > { %v1375_v43 = vsub.f32 1.5, %v1374_v42 }
 0x70c   : > { %v1391_v54 = vadd.f32 %v1994_v48, %v1386_v49 }
 0x70d   : > { %v1376_v46 = vmul.f32 %v2020_v15, %v1375_v43 }
 0x70f   : > { %v1380_v47 = vsel %vm1379_vm2, %v2020_v15, %v1376_v46 }
 0x710   : > { %v1382_v50 = vmul.f32 %v1380_v47, %v1348_v25 }
 0x712   : > { %v1387_v53 = vmul.f32 %v1993_v44, %v1382_v50 }
 0x714   : > { %v1392_v56 = vadd.f32 %v1994_v48, %v1387_v53 }
 0x716   : > { %v1393_v57 = vpack.c.bf16 %v1392_v56, %v1391_v54 }
 0x718   : > { %1898 = vmatmul.msk.bf16.vlgmr.msra.gmra.mxu0 %vm852_vm8, %v1393_v57 }
 0x795   : > { %v1426_v62 = vpop.f32.mrf.mxu0 }
 0x796   : > { %v1427_v0 = vadd.f32 %v1995_v61, %v1426_v62 }
 0x798   : > { %v1431_v1 = vmul.f32 %v1427_v0, %v1427_v0 }
 0x79a   : > { %v1433_v2 = vmul.f32 %v1431_v1, %v1427_v0 }
 0x79c   : > { %v1435_v3 = vmul.f32 0.044715, %v1433_v2 }
 0x79d   : > { %v1428_v4 = vpop.f32.mrf.mxu0 }
 0x79e   : > { %v1437_v5 = vadd.f32 %v1435_v3, %v1427_v0  ;;  %v1429_v6 = vadd.f32 %v1995_v61, %v1428_v4 }
 0x7a0   : > { %v1439_v7 = vmul.f32 0.7978846, %v1437_v5  ;;  %v1432_v8 = vmul.f32 %v1429_v6, %v1429_v6 }
 0x7a2   : > { %v1434_v9 = vmul.f32 %v1432_v8, %v1429_v6  ;;  %2021 = vtanh.f32 %v1439_v7 }
 0x7a4   : > { %v1436_v10 = vmul.f32 0.044715, %v1434_v9 }
 0x7a6   : > { %v1438_v11 = vadd.f32 %v1436_v10, %v1429_v6 }
 0x7a8   : > { %v1440_v13 = vmul.f32 0.7978846, %v1438_v11  ;;  %v2022_v16 = vpop.eup %2021 }
 0x7a9   : > { %v1443_v17 = vadd.f32 1.0, %v2022_v16 }
 0x7aa   : > { %2023 = vtanh.f32 %v1440_v13 }
 0x7ab   : > { %v1445_v19 = vmul.f32 0.5, %v1443_v17 }
 0x7ad   : > { %v1447_v52 = vmul.f32 %v1445_v19, %v1427_v0 }
 0x7b0   : > { %v2024_v51 = vpop.eup %2023 }
 0x7b1   : > { %v1444_v20 = vadd.f32 1.0, %v2024_v51 }
 0x7b3   : > { %v1446_v21 = vmul.f32 0.5, %v1444_v20 }
 0x7b5   : > { %v1448_v22 = vmul.f32 %v1446_v21, %v1429_v6 }
 0x7b7   : > { %v1449_v23 = vpack.c.bf16 %v1448_v22, %v1447_v52 }
 0x7b9   : > { %1915 = vmatmul.msk.bf16.vlgmr.msra.gmra.mxu1 %vm1486_vm3, %v1449_v23 }
 0x836   : > { %v1499_v25 = vpop.f32.mrf.mxu1 }
 0x837   : > { %v1500_v26 = vadd.f32 %v1996_v24, %v1499_v25 }
 0x839   : > { %v1504_v27 = vadd.f32 %v1500_v26, %v1391_v54 }
 0x83b   : > { %v1508_v28 = vsel %vm852_vm8, %v1504_v27, 0.0 }
 0x83c   : > { %1509 = vadd.xlane.f32.xlu0 %v1508_v28 }
 0x83e   : > { %v1501_v29 = vpop.f32.mrf.mxu1 }
 0x83f   : > { %v1502_v30 = vadd.f32 %v1996_v24, %v1501_v29 }
 0x841   : > { %v1505_v31 = vadd.f32 %v1502_v30, %v1392_v56  ;;  %v1997_v56 = vld [vmem:[%s747_s19] ss:$0 sm:$0xff] }
 0x843   : > { %v1511_v32 = vsel %vm852_vm8, %v1505_v31, 0.0 }
 0x844   : > { %1512 = vadd.xlane.f32.xlu1 %v1511_v32 }
 0x8af   : > { %v1510_v33 = vpop.xlane.xlu0 %1509 }
 0x8b0   : > { %v1514_v55 = vmul.f32 %v1510_v33, %v2364_v18 }
 0x8b2   : > { %v1516_v34 = vsub.f32 %v1504_v27, %v1514_v55 }
 0x8b4   : > { %v1518_v12 = vmul.f32 %v1516_v34, %v1516_v34 }
 0x8b6   : > { %v1520_v14 = vsel %vm852_vm8, %v1518_v12, 0.0 }
 0x8b7   : > { %v1513_v35 = vpop.xlane.xlu1 %1512  ;;  %1521 = vadd.xlane.f32.xlu2 %v1520_v14 }
 0x8b8   : > { %v1515_v36 = vmul.f32 %v1513_v35, %v2364_v18 }
 0x8ba   : > { %v1517_v37 = vsub.f32 %v1505_v31, %v1515_v36 }
 0x8bc   : > { %v1519_v15 = vmul.f32 %v1517_v37, %v1517_v37 }
 0x8be   : > { %v1523_v38 = vsel %vm852_vm8, %v1519_v15, 0.0 }
 0x8bf   : > { %1524 = vadd.xlane.f32.xlu0 %v1523_v38 }
 0x92a   : > { %v1522_v39 = vpop.xlane.xlu2 %1521 }
 0x92b   : > { %v1526_v40 = vmul.f32 %v1522_v39, %v2364_v18 }
 0x92d   : > { %v1528_v41 = vadd.f32 1e-12, %v1526_v40 }
 0x92f   : > { %2025 = vrsqrt.f32 %v1528_v41  ;;  %vm1536_vm5 = vweird.f32 %v1528_v41 }
 0x932   : > { %v1525_v42 = vpop.xlane.xlu0 %1524 }
 0x933   : > { %v1527_v43 = vmul.f32 %v1525_v42, %v2364_v18 }
 0x935   : > { %v2026_v44 = vpop.eup %2025  ;;  %v1529_v45 = vadd.f32 1e-12, %v1527_v43 }
 0x936   : > { %v1531_v46 = vmul.f32 %v2026_v44, %v1528_v41  ;;  %vm1537_vm4 = vweird.f32 %v2026_v44 }
 0x937   : > { %2027 = vrsqrt.f32 %v1529_v45  ;;  %vm1538_vm6 = vmor %vm1536_vm5, %vm1537_vm4  ;;  %vm1546_vm9 = vweird.f32 %v1529_v45 }
 0x938   : > { %v1532_v47 = vmul.f32 %v2026_v44, %v1531_v46 }
 0x93a   : > { %v1533_v48 = vmul.f32 0.5, %v1532_v47 }
 0x93c   : > { %v1534_v49 = vsub.f32 1.5, %v1533_v48 }
 0x93d   : > { %v2028_v50 = vpop.eup %2027 }
 0x93e   : > { %v1535_v53 = vmul.f32 %v2026_v44, %v1534_v49  ;;  %v1541_v54 = vmul.f32 %v2028_v50, %v1529_v45  ;;  %vm1547_vm7 = vweird.f32 %v2028_v50 }
 0x93f   : > { %vm1548_vm10 = vmor %vm1546_vm9, %vm1547_vm7 }
 0x940   : > { %v1539_v18 = vsel %vm1538_vm6, %v2026_v44, %v1535_v53  ;;  %v1542_v57 = vmul.f32 %v2028_v50, %v1541_v54 }
 0x941   : > { %v1550_v59 = vmul.f32 %v1539_v18, %v1516_v34 }
 0x942   : > { %v1543_v60 = vmul.f32 0.5, %v1542_v57 }
 0x943   : > { %v1555_v61 = vmul.f32 %v1997_v56, %v1550_v59 }
 0x944   : > { %v1544_v62 = vsub.f32 1.5, %v1543_v60 }
 0x945   : > { %v1560_v63 = vadd.f32 %v1998_v58, %v1555_v61 }
 0x946   : > { %v1545_v0 = vmul.f32 %v2028_v50, %v1544_v62 }
 0x947   : > { %1562 = vst.msk [vmem:[#allocation2] sm:$0xff] %vm852_vm8, %v1560_v63 }
 0x948   : > { %v1549_v1 = vsel %vm1548_vm10, %v2028_v50, %v1545_v0 }
 0x949   : > { %v1551_v2 = vmul.f32 %v1549_v1, %v1517_v37 }
 0x94b   : > { %v1556_v3 = vmul.f32 %v1997_v56, %v1551_v2  ;;  %1567 = sbr.rel (%p1916_p8) target bundleno = 2388 (0x954), region = 92 }
 0x94d   : > { %v1561_v4 = vadd.f32 %v1998_v58, %v1556_v3 }
 0x94f   : > { %1563 = vst.msk [vmem:[#allocation2 + $0x8] sm:$0xff] %vm852_vm8, %v1561_v4 }
 0x950   : > { %v1570_v5 = vrot.slane %v1561_v4, 7  ;;  %vm1571_vm11 = vcmask 1041409   ;;  %vm1574_vm12 = vcmask 254976  }
 0x952   : > { %v1572_v6 = vsel %vm1571_vm11, %v1570_v5, %v1560_v63 }
 0x953   : > { %1575 = vst.msk [vmem:[#allocation3] sm:$0x3] %vm1574_vm12, %v1572_v6 }
 0x954 PF: > { %s2477_s10 = sld [smem:[#allocation7_spill]]  ;;  %s2087_s26 = smov [#allocation3]  }
 0x955   : > { %s2479_s22 = sld [smem:[#allocation16_spill]]  ;;  %s1584_s24 = sshll.u32 %s2087_s26, 4  ;;  %s1585_s24 = int_to_ptr.vmem [resolvable:$true] %s1584_s24 }
 0x95a   : > { %s2478_s16 = sadd.s32 4294967295, %s2477_s10  }
 0x95b   : > { %p1949_p9 = scmp.eq.s32.totalorder %s2478_s16, 1  ;;  %s1586_s27 = sshll.u32 %s2479_s22, 4  ;;  %s1587_s27 = int_to_ptr.hbm [resolvable:$true] %s1586_s27 }
 0x95d   : > { %1946 = dma.vmem_to_hbm [thread:$0]  (%p1949_p9), %s1585_s24, 32, %s1587_s27, [#allocation4]  }
 0x95e   : > { %2070 = dma.done.wait (%p1949_p9), [#allocation4], 32  }
 0x95f   : > { %2072 = vsyncadd (%p1949_p9), [#allocation4], 4294967264 }
 0x960 PF: > { %s2480_s21 = sld [smem:[#allocation7_spill]] }
 0x961   : > { %s2482_s22 = sld [smem:[#allocation8_spill]] }
 0x966   : > { %s27_s23 = sadd.s32 1, %s2480_s21   ;;  %s2481_s21 = sld [smem:[#allocation6_spill]] }
 0x967   : > { %p24_p10 = scmp.ge.s32.totalorder %s27_s23, 4  }
 0x969   :  { %26 = sbr.rel (!%p24_p10) target bundleno = 10 (0xa), region = 170 }
 0x96e   :  { %1600 = vsyncpa [#allocation4], 1 }
 0x96f   :  { %1602 = vsyncpa [#allocation4 + $0x1], 1 }

</bundles_post_ra>
